<compile_context>
chip_gen: v6e
topology: v6e:2x2x1
jax: 0.10.0
libtpu: 0.0.40
codegen_flags: <defaults>
</compile_context>

<pallas_src>
import math
from functools import partial

import jax
import jax.numpy as jnp
from jax import lax
from jax.experimental import pallas as pl
from jax.experimental.pallas import tpu as pltpu


_NEG_INF = -1e30          # finite mask/init value: avoids inf-inf NaNs when tiling
_TQ_TARGET = 256          # attention q/kv tile target (v6e/v7x); 128 on v5e
_TT_TARGET = 256          # projection sequence-tile target


def _chip_kind():
    try:
        return jax.devices()[0].device_kind.lower()
    except Exception:
        return ""


def _vmem_cap_bytes(kind):
    # v7x has only 64 MiB VMEM per TensorCore -> keep the scoped budget conservative.
    return (48 << 20) if "v7" in kind else (96 << 20)


def _tq_target(kind):
    # v5e: 128-wide MXU, single vst slot, no bf16 VALU -> smaller attention tiles.
    return 128 if "v5" in kind else _TQ_TARGET


def _pick_tile(n, target, align=8):
    """Largest divisor of n that is <= target and a multiple of `align` (else n)."""
    if n <= target:
        return n
    for cand in range(target - target % align, 0, -align):
        if n % cand == 0:
            return cand
    return n


def _attn_vmem_need(g, T, tq, hd):
    kv = 2 * 2 * g * T * hd * 2       # resident K+V, double-buffered, bf16
    qo = 2 * 2 * g * tq * hd * 2      # q + o blocks, double-buffered, bf16
    scr = g * tq * (hd + 2) * 4       # m/l/acc scratch, f32
    return kv + qo + scr


def _pick_group(bh, hd, T, tq, budget):
    """Heads per attention grid step: largest divisor of bh that is <= 128//hd and
    whose resident-K/V VMEM footprint fits the budget."""
    target = max(1, 128 // max(hd, 1))
    for g in range(min(bh, target), 0, -1):
        if bh % g == 0 and _attn_vmem_need(g, T, tq, hd) <= budget:
            return g
    return 1


# --------------------------------------------------------------------------- #
# 1) Fused QKV projection:
#    x (B,T,C) f32, w (3C,C) bf16 (q rows pre-scaled) -> q/k/v (B,H,T,hd) bf16
# --------------------------------------------------------------------------- #
def _qkv_proj_kernel(x_ref, w_ref, q_ref, k_ref, v_ref, *, heads, hd):
    C = heads * hd
    x = x_ref[0].astype(jnp.bfloat16)                      # (tt, C): bf16 MXU inputs
    # One wide matmul (tt, C) x (C, 3C), contracting the C axis of the original torch
    # weight (no materialized w.T).  N = 3C keeps the MXU full; accumulate in f32.
    y = lax.dot_general(x, w_ref[...], (((1,), (1,)), ((), ())),
                        preferred_element_type=jnp.float32)
    y = y.astype(jnp.bfloat16)                             # ".half()" (bf16 on TPU)
    # Per-head / per-q,k,v split via static lane slices — writes the head-major
    # (B, H, T, hd) layout directly, no HBM reshape/transpose round trip.
    for h in range(heads):
        q_ref[0, h] = y[:, h * hd:(h + 1) * hd]
        k_ref[0, h] = y[:, C + h * hd:C + (h + 1) * hd]
        v_ref[0, h] = y[:, 2 * C + h * hd:2 * C + (h + 1) * hd]


def qkv_projection(x, w16, heads):
    """x: (B,T,C) f32, w16: (3C, C) bf16 -> q, k, v each (B, heads, T, hd) bf16."""
    B, T, C = x.shape
    hd = C // heads
    kind = _chip_kind()
    tt = _pick_tile(T, _TT_TARGET)
    grid = (B, T // tt)

    x_spec = pl.BlockSpec((1, tt, C), lambda b, t: (b, t, 0))
    # Full bf16 weight resident in VMEM: constant block index -> DMA'd once and reused
    # by every (b, t-tile) grid step.
    # TODO(synk): tile the 3C output axis if 3*C*C bf16 exceeds the VMEM budget (C >~ 3K).
    w_spec = pl.BlockSpec((3 * C, C), lambda b, t: (0, 0))
    out_spec = pl.BlockSpec((1, heads, tt, hd), lambda b, t: (b, 0, t, 0))
    out_shape = jax.ShapeDtypeStruct((B, heads, T, hd), jnp.bfloat16)

    need = 2 * tt * C * 4 + 2 * 3 * C * C * 2 + 3 * 2 * heads * tt * hd * 2
    vmem_limit = int(min(_vmem_cap_bytes(kind), max(32 << 20, int(need * 1.25))))

    return pl.pallas_call(
        partial(_qkv_proj_kernel, heads=heads, hd=hd),
        out_shape=(out_shape, out_shape, out_shape),
        grid=grid,
        in_specs=[x_spec, w_spec],
        out_specs=(out_spec, out_spec, out_spec),
        compiler_params=pltpu.CompilerParams(
            dimension_semantics=("parallel", "parallel"),
            vmem_limit_bytes=vmem_limit),
    )(x, w16)


# --------------------------------------------------------------------------- #
# 2) Causal flash attention: q/k/v (B*H, T, hd) bf16 -> (B*H, T, hd) bf16
#    (scale already folded into q at projection time)
# --------------------------------------------------------------------------- #
def _flash_attn_kernel(qi_tab, ki_tab, q_ref, k_ref, v_ref, o_ref,
                       m_sc, l_sc, acc_sc, *, tkv):
    s_idx = pl.program_id(1)
    qi = qi_tab[s_idx]                       # prefetched triangular-step lookup (SMEM)
    ki = ki_tab[s_idx]

    @pl.when(ki == 0)
    def _init():
        m_sc[...] = jnp.full(m_sc.shape, _NEG_INF, m_sc.dtype)
        l_sc[...] = jnp.zeros(l_sc.shape, l_sc.dtype)
        acc_sc[...] = jnp.zeros(acc_sc.shape, acc_sc.dtype)

    # K/V for the whole head-group are VMEM-resident (block (G, T, hd), index (g,0,0));
    # slice the current kv tile out of VMEM instead of re-DMA'ing it per q tile.
    kv_start = pl.multiple_of(ki * tkv, tkv)
    k_tile = k_ref[:, pl.ds(kv_start, tkv), :]          # (G, tkv, hd) bf16
    v_tile = v_ref[:, pl.ds(kv_start, tkv), :]

    def _tile(apply_mask):
        # q is already scaled by 1/sqrt(hd) (folded into the projection weight in f32).
        s = jnp.einsum("gqd,gkd->gqk", q_ref[...], k_tile,
                       preferred_element_type=jnp.float32)      # f32 (G, tq, tkv)
        if apply_mask:  # diagonal tile only (tq == tkv and qi == ki -> local compare)
            tq_, tk_ = s.shape[1], s.shape[2]
            row = lax.broadcasted_iota(jnp.int32, (tq_, tk_), 0)
            col = lax.broadcasted_iota(jnp.int32, (tq_, tk_), 1)
            s = jnp.where((col <= row)[None, :, :], s, _NEG_INF)
        m_prev = m_sc[...]
        m_new = jnp.maximum(m_prev, jnp.max(s, axis=-1, keepdims=True))
        alpha = jnp.exp(m_prev - m_new)
        p = jnp.exp(s - m_new)
        l_sc[...] = alpha * l_sc[...] + jnp.sum(p, axis=-1, keepdims=True)
        acc_sc[...] = alpha * acc_sc[...] + jnp.einsum(
            "gqk,gkd->gqd", p.astype(v_tile.dtype), v_tile,
            preferred_element_type=jnp.float32)
        m_sc[...] = m_new

    @pl.when(ki < qi)            # strictly-below-diagonal tile: no element-wise mask
    def _body():
        _tile(apply_mask=False)

    @pl.when(ki == qi)           # diagonal tile: mask + finalize (last tile for this qi)
    def _diag():
        _tile(apply_mask=True)
        inv_l = pl.reciprocal(l_sc[...], approx=True)    # EUP slot, ~free
        # TODO(synk): hd < 128 makes this a partially-masked (lane-sparse) store;
        # packing 2 heads along lanes would make it dense.
        o_ref[...] = (acc_sc[...] * inv_l).astype(o_ref.dtype)
    # ki > qi tiles are never iterated: the grid enumerates only the lower triangle.


def causal_flash_attention(q, k, v):
    """q, k, v: (B*H, T, hd) bf16 (q pre-scaled) -> (B*H, T, hd) bf16 (causal)."""
    BH, T, hd = q.shape
    kind = _chip_kind()
    tq = _pick_tile(T, _tq_target(kind))
    tkv = tq                                     # keep diagonal-tile logic simple
    nq = T // tq
    cap = _vmem_cap_bytes(kind)
    G = _pick_group(BH, hd, T, tq, budget=int(cap * 0.7))
    # TODO(synk): if even G == 1 resident K/V exceeds VMEM (very long T), fall back to a
    # per-tile kv BlockSpec (clamped index_map) instead of whole-T residency.

    # Flattened lower-triangular grid (qi-major, ki ascending): no empty (ki > qi) steps.
    pairs = [(qi, ki) for qi in range(nq) for ki in range(qi + 1)]
    qi_tab = jnp.asarray([p[0] for p in pairs], dtype=jnp.int32)
    ki_tab = jnp.asarray([p[1] for p in pairs], dtype=jnp.int32)
    grid = (BH // G, len(pairs))

    qo_spec = pl.BlockSpec((G, tq, hd), lambda g, s, qi_t, ki_t: (g, qi_t[s], 0))
    kv_spec = pl.BlockSpec((G, T, hd), lambda g, s, qi_t, ki_t: (g, 0, 0))

    need = _attn_vmem_need(G, T, tq, hd)
    vmem_limit = int(min(cap, max(32 << 20, int(need * 1.25))))

    return pl.pallas_call(
        partial(_flash_attn_kernel, tkv=tkv),
        out_shape=jax.ShapeDtypeStruct((BH, T, hd), q.dtype),
        grid_spec=pltpu.PrefetchScalarGridSpec(
            num_scalar_prefetch=2,
            grid=grid,
            in_specs=[qo_spec, kv_spec, kv_spec],
            out_specs=qo_spec,
            scratch_shapes=[
                pltpu.VMEM((G, tq, 1), jnp.float32),    # running max  m
                pltpu.VMEM((G, tq, 1), jnp.float32),    # running sum  l
                pltpu.VMEM((G, tq, hd), jnp.float32),   # running acc  (unnormalized o)
            ]),
        compiler_params=pltpu.CompilerParams(
            dimension_semantics=("parallel", "arbitrary"),
            vmem_limit_bytes=vmem_limit),
    )(qi_tab, ki_tab, q, k, v)


# --------------------------------------------------------------------------- #
# 3) Full forward
# --------------------------------------------------------------------------- #
@partial(jax.jit, static_argnums=(2,))
def flash_mha_forward(x, w_qkv, heads):
    """x: (B, T, C) f32, w_qkv: (3C, C) f32 (torch nn.Linear weight layout)."""
    B, T, C = x.shape
    assert C % heads == 0
    hd = C // heads

    # Fold 1/sqrt(hd) into the q rows of the weight in f32 (before the bf16 cast):
    # removes the per-kv-tile q*scale pass from the attention inner loop and is more
    # accurate than scaling after the bf16 rounding.
    w_scaled = w_qkv.at[:C].multiply(1.0 / math.sqrt(hd))
    w16 = w_scaled.astype(jnp.bfloat16)

    # qkv(x).view(B,T,3,H,hd).permute(2,0,3,1,4).half(), emitted directly as head-split
    # bf16 (B, H, T, hd) slabs from one wide bf16 matmul per (b, t-tile).
    q, k, v = qkv_projection(x, w16, heads)

    o = causal_flash_attention(q.reshape(B * heads, T, hd),
                               k.reshape(B * heads, T, hd),
                               v.reshape(B * heads, T, hd))
    o = o.reshape(B, heads, T, hd)

    # .contiguous().view(B, T, C) on the (B, H, T, hd) output (no transpose) --
    # faithful to the PyTorch module's row-major reshape.
    return o.reshape(B, T, C)


# --------------------------------------------------------------------------- #
# Pure-JAX reference (same semantics) for a sanity check
# --------------------------------------------------------------------------- #
def _reference(x, w_qkv, heads):
    B, T, C = x.shape
    hd = C // heads
    qkv = (x.reshape(B * T, C) @ w_qkv.T).reshape(B, T, 3, heads, hd)
    qkv = jnp.transpose(qkv, (2, 0, 3, 1, 4)).astype(jnp.bfloat16)
    q, k, v = (t.astype(jnp.float32) for t in (qkv[0], qkv[1], qkv[2]))
    s = jnp.einsum("bhqd,bhkd->bhqk", q, k) / math.sqrt(hd)
    mask = jnp.tril(jnp.ones((T, T), dtype=bool))
    s = jnp.where(mask[None, None], s, -jnp.inf)
    p = jax.nn.softmax(s, axis=-1)
    o = jnp.einsum("bhqk,bhkd->bhqd", p, v)          # (B, H, T, hd)
    return o.reshape(B, T, C)                        # same no-transpose view


if __name__ == "__main__":
    B, T, C, heads = 2, 8, 32, 4

    key = jax.random.PRNGKey(0)
    kx, kw = jax.random.split(key)
    x = jax.random.normal(kx, (B, T, C), dtype=jnp.float32)
    # nn.Linear(dim, 3*dim, bias=False) -> weight shape (3*dim, dim)
    w_qkv = jax.random.normal(kw, (3 * C, C), dtype=jnp.float32) * 0.02

    out = flash_mha_forward(x, w_qkv, heads)
    out = jax.block_until_ready(out)

    assert out.shape == (B, T, C)
    assert out.dtype == jnp.bfloat16

    ref = _reference(x, w_qkv, heads)
    err = float(jnp.max(jnp.abs(out.astype(jnp.float32) - ref)))
    assert err < 5e-2, f"max abs err {err}"

    print("KERNEL_OK")
</pallas_src>

<mosaic_0001>
module attributes {stable_mosaic.version = 11 : i64} {
  func.func @_qkv_proj_kernel(%arg0: i32, %arg1: i32, %arg2: memref<1x8x32xf32, #tpu.memory_space<vmem>>, %arg3: memref<96x32xbf16, #tpu.memory_space<vmem>>, %arg4: memref<1x4x8x8xbf16, #tpu.memory_space<vmem>>, %arg5: memref<1x4x8x8xbf16, #tpu.memory_space<vmem>>, %arg6: memref<1x4x8x8xbf16, #tpu.memory_space<vmem>>) attributes {dimension_semantics = [#tpu.dimension_semantics<parallel>, #tpu.dimension_semantics<parallel>], iteration_bounds = array<i64: 2, 1>, scalar_prefetch = 0 : i64, scratch_operands = 0 : i64, tpu.core_type = #tpu.core_type<tc>, window_params = [{transform_indices = @transform_0, window_bounds = array<i64: 1, 8, 32>}, {pipeline_mode = #tpu.pipeline_mode<synchronous>, transform_indices = @transform_1, window_bounds = array<i64: 96, 32>}, {transform_indices = @transform_2, window_bounds = array<i64: 1, 4, 8, 8>}, {transform_indices = @transform_3, window_bounds = array<i64: 1, 4, 8, 8>}, {transform_indices = @transform_4, window_bounds = array<i64: 1, 4, 8, 8>}]} {
    %c0 = arith.constant 0 : index
    %c0_0 = arith.constant 0 : index
    %c0_1 = arith.constant 0 : index
    %0 = vector.load %arg2[%c0, %c0_0, %c0_1] : memref<1x8x32xf32, #tpu.memory_space<vmem>>, vector<1x8x32xf32>
    %1 = vector.shape_cast %0 : vector<1x8x32xf32> to vector<8x32xf32>
    %2 = arith.truncf %1 : vector<8x32xf32> to vector<8x32xbf16>
    %c0_2 = arith.constant 0 : index
    %c0_3 = arith.constant 0 : index
    %3 = vector.load %arg3[%c0_2, %c0_3] : memref<96x32xbf16, #tpu.memory_space<vmem>>, vector<96x32xbf16>
    %cst = arith.constant dense<0.000000e+00> : vector<8x96xf32>
    %4 = tpu.matmul %2, %3, %cst {dimension_numbers = #tpu.dot_dimension_numbers<[1], [1], [0], [0], [0, 0, 1, 0], [], []>} : vector<8x32xbf16>, vector<96x32xbf16>, vector<8x96xf32> -> vector<8x96xf32>
    %5 = arith.truncf %4 : vector<8x96xf32> to vector<8x96xbf16>
    %6 = vector.extract_strided_slice %5 {offsets = [0, 0], sizes = [8, 8], strides = [1, 1]} : vector<8x96xbf16> to vector<8x8xbf16>
    %c0_4 = arith.constant 0 : index
    %c0_5 = arith.constant 0 : index
    %c0_6 = arith.constant 0 : index
    %c0_7 = arith.constant 0 : index
    %7 = vector.load %arg4[%c0_4, %c0_5, %c0_6, %c0_7] : memref<1x4x8x8xbf16, #tpu.memory_space<vmem>>, vector<1x1x8x8xbf16>
    %8 = vector.shape_cast %7 : vector<1x1x8x8xbf16> to vector<8x8xbf16>
    %9 = vector.shape_cast %6 : vector<8x8xbf16> to vector<1x1x8x8xbf16>
    tpu.vector_store %arg4[%c0_4, %c0_5, %c0_6, %c0_7], %9 {strides = array<i32>} : memref<1x4x8x8xbf16, #tpu.memory_space<vmem>>, vector<1x1x8x8xbf16>,
    %10 = vector.extract_strided_slice %5 {offsets = [0, 32], sizes = [8, 8], strides = [1, 1]} : vector<8x96xbf16> to vector<8x8xbf16>
    %c0_8 = arith.constant 0 : index
    %c0_9 = arith.constant 0 : index
    %c0_10 = arith.constant 0 : index
    %c0_11 = arith.constant 0 : index
    %11 = vector.load %arg5[%c0_8, %c0_9, %c0_10, %c0_11] : memref<1x4x8x8xbf16, #tpu.memory_space<vmem>>, vector<1x1x8x8xbf16>
    %12 = vector.shape_cast %11 : vector<1x1x8x8xbf16> to vector<8x8xbf16>
    %13 = vector.shape_cast %10 : vector<8x8xbf16> to vector<1x1x8x8xbf16>
    tpu.vector_store %arg5[%c0_8, %c0_9, %c0_10, %c0_11], %13 {strides = array<i32>} : memref<1x4x8x8xbf16, #tpu.memory_space<vmem>>, vector<1x1x8x8xbf16>,
    %14 = vector.extract_strided_slice %5 {offsets = [0, 64], sizes = [8, 8], strides = [1, 1]} : vector<8x96xbf16> to vector<8x8xbf16>
    %c0_12 = arith.constant 0 : index
    %c0_13 = arith.constant 0 : index
    %c0_14 = arith.constant 0 : index
    %c0_15 = arith.constant 0 : index
    %15 = vector.load %arg6[%c0_12, %c0_13, %c0_14, %c0_15] : memref<1x4x8x8xbf16, #tpu.memory_space<vmem>>, vector<1x1x8x8xbf16>
    %16 = vector.shape_cast %15 : vector<1x1x8x8xbf16> to vector<8x8xbf16>
    %17 = vector.shape_cast %14 : vector<8x8xbf16> to vector<1x1x8x8xbf16>
    tpu.vector_store %arg6[%c0_12, %c0_13, %c0_14, %c0_15], %17 {strides = array<i32>} : memref<1x4x8x8xbf16, #tpu.memory_space<vmem>>, vector<1x1x8x8xbf16>,
    %18 = vector.extract_strided_slice %5 {offsets = [0, 8], sizes = [8, 8], strides = [1, 1]} : vector<8x96xbf16> to vector<8x8xbf16>
    %c0_16 = arith.constant 0 : index
    %c1 = arith.constant 1 : index
    %c0_17 = arith.constant 0 : index
    %c0_18 = arith.constant 0 : index
    %19 = vector.load %arg4[%c0_16, %c1, %c0_17, %c0_18] : memref<1x4x8x8xbf16, #tpu.memory_space<vmem>>, vector<1x1x8x8xbf16>
    %20 = vector.shape_cast %19 : vector<1x1x8x8xbf16> to vector<8x8xbf16>
    %21 = vector.shape_cast %18 : vector<8x8xbf16> to vector<1x1x8x8xbf16>
    tpu.vector_store %arg4[%c0_16, %c1, %c0_17, %c0_18], %21 {strides = array<i32>} : memref<1x4x8x8xbf16, #tpu.memory_space<vmem>>, vector<1x1x8x8xbf16>,
    %22 = vector.extract_strided_slice %5 {offsets = [0, 40], sizes = [8, 8], strides = [1, 1]} : vector<8x96xbf16> to vector<8x8xbf16>
    %c0_19 = arith.constant 0 : index
    %c1_20 = arith.constant 1 : index
    %c0_21 = arith.constant 0 : index
    %c0_22 = arith.constant 0 : index
    %23 = vector.load %arg5[%c0_19, %c1_20, %c0_21, %c0_22] : memref<1x4x8x8xbf16, #tpu.memory_space<vmem>>, vector<1x1x8x8xbf16>
    %24 = vector.shape_cast %23 : vector<1x1x8x8xbf16> to vector<8x8xbf16>
    %25 = vector.shape_cast %22 : vector<8x8xbf16> to vector<1x1x8x8xbf16>
    tpu.vector_store %arg5[%c0_19, %c1_20, %c0_21, %c0_22], %25 {strides = array<i32>} : memref<1x4x8x8xbf16, #tpu.memory_space<vmem>>, vector<1x1x8x8xbf16>,
    %26 = vector.extract_strided_slice %5 {offsets = [0, 72], sizes = [8, 8], strides = [1, 1]} : vector<8x96xbf16> to vector<8x8xbf16>
    %c0_23 = arith.constant 0 : index
    %c1_24 = arith.constant 1 : index
    %c0_25 = arith.constant 0 : index
    %c0_26 = arith.constant 0 : index
    %27 = vector.load %arg6[%c0_23, %c1_24, %c0_25, %c0_26] : memref<1x4x8x8xbf16, #tpu.memory_space<vmem>>, vector<1x1x8x8xbf16>
    %28 = vector.shape_cast %27 : vector<1x1x8x8xbf16> to vector<8x8xbf16>
    %29 = vector.shape_cast %26 : vector<8x8xbf16> to vector<1x1x8x8xbf16>
    tpu.vector_store %arg6[%c0_23, %c1_24, %c0_25, %c0_26], %29 {strides = array<i32>} : memref<1x4x8x8xbf16, #tpu.memory_space<vmem>>, vector<1x1x8x8xbf16>,
    %30 = vector.extract_strided_slice %5 {offsets = [0, 16], sizes = [8, 8], strides = [1, 1]} : vector<8x96xbf16> to vector<8x8xbf16>
    %c0_27 = arith.constant 0 : index
    %c2 = arith.constant 2 : index
    %c0_28 = arith.constant 0 : index
    %c0_29 = arith.constant 0 : index
    %31 = vector.load %arg4[%c0_27, %c2, %c0_28, %c0_29] : memref<1x4x8x8xbf16, #tpu.memory_space<vmem>>, vector<1x1x8x8xbf16>
    %32 = vector.shape_cast %31 : vector<1x1x8x8xbf16> to vector<8x8xbf16>
    %33 = vector.shape_cast %30 : vector<8x8xbf16> to vector<1x1x8x8xbf16>
    tpu.vector_store %arg4[%c0_27, %c2, %c0_28, %c0_29], %33 {strides = array<i32>} : memref<1x4x8x8xbf16, #tpu.memory_space<vmem>>, vector<1x1x8x8xbf16>,
    %34 = vector.extract_strided_slice %5 {offsets = [0, 48], sizes = [8, 8], strides = [1, 1]} : vector<8x96xbf16> to vector<8x8xbf16>
    %c0_30 = arith.constant 0 : index
    %c2_31 = arith.constant 2 : index
    %c0_32 = arith.constant 0 : index
    %c0_33 = arith.constant 0 : index
    %35 = vector.load %arg5[%c0_30, %c2_31, %c0_32, %c0_33] : memref<1x4x8x8xbf16, #tpu.memory_space<vmem>>, vector<1x1x8x8xbf16>
    %36 = vector.shape_cast %35 : vector<1x1x8x8xbf16> to vector<8x8xbf16>
    %37 = vector.shape_cast %34 : vector<8x8xbf16> to vector<1x1x8x8xbf16>
    tpu.vector_store %arg5[%c0_30, %c2_31, %c0_32, %c0_33], %37 {strides = array<i32>} : memref<1x4x8x8xbf16, #tpu.memory_space<vmem>>, vector<1x1x8x8xbf16>,
    %38 = vector.extract_strided_slice %5 {offsets = [0, 80], sizes = [8, 8], strides = [1, 1]} : vector<8x96xbf16> to vector<8x8xbf16>
    %c0_34 = arith.constant 0 : index
    %c2_35 = arith.constant 2 : index
    %c0_36 = arith.constant 0 : index
    %c0_37 = arith.constant 0 : index
    %39 = vector.load %arg6[%c0_34, %c2_35, %c0_36, %c0_37] : memref<1x4x8x8xbf16, #tpu.memory_space<vmem>>, vector<1x1x8x8xbf16>
    %40 = vector.shape_cast %39 : vector<1x1x8x8xbf16> to vector<8x8xbf16>
    %41 = vector.shape_cast %38 : vector<8x8xbf16> to vector<1x1x8x8xbf16>
    tpu.vector_store %arg6[%c0_34, %c2_35, %c0_36, %c0_37], %41 {strides = array<i32>} : memref<1x4x8x8xbf16, #tpu.memory_space<vmem>>, vector<1x1x8x8xbf16>,
    %42 = vector.extract_strided_slice %5 {offsets = [0, 24], sizes = [8, 8], strides = [1, 1]} : vector<8x96xbf16> to vector<8x8xbf16>
    %c0_38 = arith.constant 0 : index
    %c3 = arith.constant 3 : index
    %c0_39 = arith.constant 0 : index
    %c0_40 = arith.constant 0 : index
    %43 = vector.load %arg4[%c0_38, %c3, %c0_39, %c0_40] : memref<1x4x8x8xbf16, #tpu.memory_space<vmem>>, vector<1x1x8x8xbf16>
    %44 = vector.shape_cast %43 : vector<1x1x8x8xbf16> to vector<8x8xbf16>
    %45 = vector.shape_cast %42 : vector<8x8xbf16> to vector<1x1x8x8xbf16>
    tpu.vector_store %arg4[%c0_38, %c3, %c0_39, %c0_40], %45 {strides = array<i32>} : memref<1x4x8x8xbf16, #tpu.memory_space<vmem>>, vector<1x1x8x8xbf16>,
    %46 = vector.extract_strided_slice %5 {offsets = [0, 56], sizes = [8, 8], strides = [1, 1]} : vector<8x96xbf16> to vector<8x8xbf16>
    %c0_41 = arith.constant 0 : index
    %c3_42 = arith.constant 3 : index
    %c0_43 = arith.constant 0 : index
    %c0_44 = arith.constant 0 : index
    %47 = vector.load %arg5[%c0_41, %c3_42, %c0_43, %c0_44] : memref<1x4x8x8xbf16, #tpu.memory_space<vmem>>, vector<1x1x8x8xbf16>
    %48 = vector.shape_cast %47 : vector<1x1x8x8xbf16> to vector<8x8xbf16>
    %49 = vector.shape_cast %46 : vector<8x8xbf16> to vector<1x1x8x8xbf16>
    tpu.vector_store %arg5[%c0_41, %c3_42, %c0_43, %c0_44], %49 {strides = array<i32>} : memref<1x4x8x8xbf16, #tpu.memory_space<vmem>>, vector<1x1x8x8xbf16>,
    %50 = vector.extract_strided_slice %5 {offsets = [0, 88], sizes = [8, 8], strides = [1, 1]} : vector<8x96xbf16> to vector<8x8xbf16>
    %c0_45 = arith.constant 0 : index
    %c3_46 = arith.constant 3 : index
    %c0_47 = arith.constant 0 : index
    %c0_48 = arith.constant 0 : index
    %51 = vector.load %arg6[%c0_45, %c3_46, %c0_47, %c0_48] : memref<1x4x8x8xbf16, #tpu.memory_space<vmem>>, vector<1x1x8x8xbf16>
    %52 = vector.shape_cast %51 : vector<1x1x8x8xbf16> to vector<8x8xbf16>
    %53 = vector.shape_cast %50 : vector<8x8xbf16> to vector<1x1x8x8xbf16>
    tpu.vector_store %arg6[%c0_45, %c3_46, %c0_47, %c0_48], %53 {strides = array<i32>} : memref<1x4x8x8xbf16, #tpu.memory_space<vmem>>, vector<1x1x8x8xbf16>,
    return
  }
  func.func @transform_0(%arg0: i32, %arg1: i32) -> (i32, i32, i32) {
    %c0_i32 = arith.constant 0 : i32
    %c0_i32_0 = arith.constant 0 : i32
    return %arg0, %arg1, %c0_i32 : i32, i32, i32
  }
  func.func @transform_1(%arg0: i32, %arg1: i32) -> (i32, i32) {
    %c0_i32 = arith.constant 0 : i32
    %c0_i32_0 = arith.constant 0 : i32
    %c0_i32_1 = arith.constant 0 : i32
    return %c0_i32, %c0_i32_0 : i32, i32
  }
  func.func @transform_2(%arg0: i32, %arg1: i32) -> (i32, i32, i32, i32) {
    %c0_i32 = arith.constant 0 : i32
    %c0_i32_0 = arith.constant 0 : i32
    %c0_i32_1 = arith.constant 0 : i32
    return %arg0, %c0_i32, %arg1, %c0_i32_0 : i32, i32, i32, i32
  }
  func.func @transform_3(%arg0: i32, %arg1: i32) -> (i32, i32, i32, i32) {
    %c0_i32 = arith.constant 0 : i32
    %c0_i32_0 = arith.constant 0 : i32
    %c0_i32_1 = arith.constant 0 : i32
    return %arg0, %c0_i32, %arg1, %c0_i32_0 : i32, i32, i32, i32
  }
  func.func @transform_4(%arg0: i32, %arg1: i32) -> (i32, i32, i32, i32) {
    %c0_i32 = arith.constant 0 : i32
    %c0_i32_0 = arith.constant 0 : i32
    %c0_i32_1 = arith.constant 0 : i32
    return %arg0, %c0_i32, %arg1, %c0_i32_0 : i32, i32, i32, i32
  }
}

module attributes {stable_mosaic.version = 11 : i64} {
  func.func @_flash_attn_kernel(%arg0: i32, %arg1: i32, %arg2: memref<1xi32, #tpu.memory_space<smem>>, %arg3: memref<1xi32, #tpu.memory_space<smem>>, %arg4: memref<8x8x8xbf16, #tpu.memory_space<vmem>>, %arg5: memref<8x8x8xbf16, #tpu.memory_space<vmem>>, %arg6: memref<8x8x8xbf16, #tpu.memory_space<vmem>>, %arg7: memref<8x8x8xbf16, #tpu.memory_space<vmem>>, %arg8: memref<8x8x1xf32, #tpu.memory_space<vmem>>, %arg9: memref<8x8x1xf32, #tpu.memory_space<vmem>>, %arg10: memref<8x8x8xf32, #tpu.memory_space<vmem>>) attributes {dimension_semantics = [#tpu.dimension_semantics<parallel>, #tpu.dimension_semantics<arbitrary>], iteration_bounds = array<i64: 1, 1>, scalar_prefetch = 2 : i64, scratch_operands = 3 : i64, tpu.core_type = #tpu.core_type<tc>, window_params = [{transform_indices = @transform_0, window_bounds = array<i64: 8, 8, 8>}, {transform_indices = @transform_1, window_bounds = array<i64: 8, 8, 8>}, {transform_indices = @transform_2, window_bounds = array<i64: 8, 8, 8>}, {transform_indices = @transform_3, window_bounds = array<i64: 8, 8, 8>}]} {
    %0 = arith.index_cast %arg1 : i32 to index
    %1 = memref.load %arg2[%0] : memref<1xi32, #tpu.memory_space<smem>>
    %2 = arith.index_cast %arg1 : i32 to index
    %3 = memref.load %arg3[%2] : memref<1xi32, #tpu.memory_space<smem>>
    %c0_i32 = arith.constant 0 : i32
    %4 = arith.cmpi eq, %3, %c0_i32 : i32
    %5 = arith.extui %4 : i1 to i32
    %c0_i32_0 = arith.constant 0 : i32
    %6 = arith.cmpi ne, %5, %c0_i32_0 : i32
    scf.if %6 {
      %cst = arith.constant -1.000000e+30 : f32
      %19 = vector.broadcast %cst : f32 to vector<8x8x1xf32>
      %c0_6 = arith.constant 0 : index
      %c0_7 = arith.constant 0 : index
      %c0_8 = arith.constant 0 : index
      %20 = vector.load %arg8[%c0_6, %c0_7, %c0_8] : memref<8x8x1xf32, #tpu.memory_space<vmem>>, vector<8x8x1xf32>
      tpu.vector_store %arg8[%c0_6, %c0_7, %c0_8], %19 {strides = array<i32>} : memref<8x8x1xf32, #tpu.memory_space<vmem>>, vector<8x8x1xf32>,
      %cst_9 = arith.constant 0.000000e+00 : f32
      %21 = vector.broadcast %cst_9 : f32 to vector<8x8x1xf32>
      %c0_10 = arith.constant 0 : index
      %c0_11 = arith.constant 0 : index
      %c0_12 = arith.constant 0 : index
      %22 = vector.load %arg9[%c0_10, %c0_11, %c0_12] : memref<8x8x1xf32, #tpu.memory_space<vmem>>, vector<8x8x1xf32>
      tpu.vector_store %arg9[%c0_10, %c0_11, %c0_12], %21 {strides = array<i32>} : memref<8x8x1xf32, #tpu.memory_space<vmem>>, vector<8x8x1xf32>,
      %cst_13 = arith.constant 0.000000e+00 : f32
      %23 = vector.broadcast %cst_13 : f32 to vector<8x8x8xf32>
      %c0_14 = arith.constant 0 : index
      %c0_15 = arith.constant 0 : index
      %c0_16 = arith.constant 0 : index
      %24 = vector.load %arg10[%c0_14, %c0_15, %c0_16] : memref<8x8x8xf32, #tpu.memory_space<vmem>>, vector<8x8x8xf32>
      tpu.vector_store %arg10[%c0_14, %c0_15, %c0_16], %23 {strides = array<i32>} : memref<8x8x8xf32, #tpu.memory_space<vmem>>, vector<8x8x8xf32>,
    } else {
    }
    %c8_i32 = arith.constant 8 : i32
    %7 = arith.muli %3, %c8_i32 : i32
    %8 = tpu.assume_multiple %7, 8 : i32
    %c0 = arith.constant 0 : index
    %9 = arith.index_cast %8 : i32 to index
    %c0_1 = arith.constant 0 : index
    %10 = vector.load %arg5[%c0, %9, %c0_1] : memref<8x8x8xbf16, #tpu.memory_space<vmem>>, vector<8x8x8xbf16>
    %c0_2 = arith.constant 0 : index
    %11 = arith.index_cast %8 : i32 to index
    %c0_3 = arith.constant 0 : index
    %12 = vector.load %arg6[%c0_2, %11, %c0_3] : memref<8x8x8xbf16, #tpu.memory_space<vmem>>, vector<8x8x8xbf16>
    %13 = arith.cmpi slt, %3, %1 : i32
    %14 = arith.extui %13 : i1 to i32
    %c0_i32_4 = arith.constant 0 : i32
    %15 = arith.cmpi ne, %14, %c0_i32_4 : i32
    scf.if %15 {
      %c0_6 = arith.constant 0 : index
      %c0_7 = arith.constant 0 : index
      %c0_8 = arith.constant 0 : index
      %19 = vector.load %arg4[%c0_6, %c0_7, %c0_8] : memref<8x8x8xbf16, #tpu.memory_space<vmem>>, vector<8x8x8xbf16>
      "tpu.trace_start"() <{level = 10 : i32, message = "gqd,gkd->gqk"}> : () -> ()
      %cst = arith.constant dense<0.000000e+00> : vector<8x8x8xf32>
      %20 = tpu.matmul %19, %10, %cst {dimension_numbers = #tpu.dot_dimension_numbers<[2], [2], [1], [1], [0, 0, 0, 1, 1, 1], [0], [0]>} : vector<8x8x8xbf16>, vector<8x8x8xbf16>, vector<8x8x8xf32> -> vector<8x8x8xf32>
      "tpu.trace_stop"() : () -> ()
      %c0_9 = arith.constant 0 : index
      %c0_10 = arith.constant 0 : index
      %c0_11 = arith.constant 0 : index
      %21 = vector.load %arg8[%c0_9, %c0_10, %c0_11] : memref<8x8x1xf32, #tpu.memory_space<vmem>>, vector<8x8x1xf32>
      %cst_12 = arith.constant dense<0xFF800000> : vector<8x8xf32>
      %22 = vector.multi_reduction <maximumf>, %20, %cst_12 [2] : vector<8x8x8xf32> to vector<8x8xf32>
      %23 = vector.shape_cast %22 : vector<8x8xf32> to vector<8x8x1xf32>
      %24 = arith.maximumf %21, %23 : vector<8x8x1xf32>
      %25 = arith.subf %21, %24 : vector<8x8x1xf32>
      %26 = math.exp %25 : vector<8x8x1xf32>
      %27 = vector.broadcast %24 : vector<8x8x1xf32> to vector<8x8x8xf32>
      %28 = arith.subf %20, %27 : vector<8x8x8xf32>
      %29 = math.exp %28 : vector<8x8x8xf32>
      %c0_13 = arith.constant 0 : index
      %c0_14 = arith.constant 0 : index
      %c0_15 = arith.constant 0 : index
      %30 = vector.load %arg9[%c0_13, %c0_14, %c0_15] : memref<8x8x1xf32, #tpu.memory_space<vmem>>, vector<8x8x1xf32>
      %31 = arith.mulf %26, %30 : vector<8x8x1xf32>
      %cst_16 = arith.constant dense<0.000000e+00> : vector<8x8xf32>
      %32 = vector.multi_reduction <add>, %29, %cst_16 [2] : vector<8x8x8xf32> to vector<8x8xf32>
      %33 = vector.shape_cast %32 : vector<8x8xf32> to vector<8x8x1xf32>
      %34 = arith.addf %31, %33 : vector<8x8x1xf32>
      %c0_17 = arith.constant 0 : index
      %c0_18 = arith.constant 0 : index
      %c0_19 = arith.constant 0 : index
      %35 = vector.load %arg9[%c0_17, %c0_18, %c0_19] : memref<8x8x1xf32, #tpu.memory_space<vmem>>, vector<8x8x1xf32>
      tpu.vector_store %arg9[%c0_17, %c0_18, %c0_19], %34 {strides = array<i32>} : memref<8x8x1xf32, #tpu.memory_space<vmem>>, vector<8x8x1xf32>,
      %c0_20 = arith.constant 0 : index
      %c0_21 = arith.constant 0 : index
      %c0_22 = arith.constant 0 : index
      %36 = vector.load %arg10[%c0_20, %c0_21, %c0_22] : memref<8x8x8xf32, #tpu.memory_space<vmem>>, vector<8x8x8xf32>
      %37 = vector.broadcast %26 : vector<8x8x1xf32> to vector<8x8x8xf32>
      %38 = arith.mulf %37, %36 : vector<8x8x8xf32>
      %39 = arith.truncf %29 : vector<8x8x8xf32> to vector<8x8x8xbf16>
      "tpu.trace_start"() <{level = 10 : i32, message = "gqk,gkd->gqd"}> : () -> ()
      %cst_23 = arith.constant dense<0.000000e+00> : vector<8x8x8xf32>
      %40 = tpu.matmul %39, %12, %cst_23 {dimension_numbers = #tpu.dot_dimension_numbers<[2], [1], [1], [2], [0, 0, 0, 1, 1, 2], [0], [0]>} : vector<8x8x8xbf16>, vector<8x8x8xbf16>, vector<8x8x8xf32> -> vector<8x8x8xf32>
      "tpu.trace_stop"() : () -> ()
      %41 = arith.addf %38, %40 : vector<8x8x8xf32>
      %c0_24 = arith.constant 0 : index
      %c0_25 = arith.constant 0 : index
      %c0_26 = arith.constant 0 : index
      %42 = vector.load %arg10[%c0_24, %c0_25, %c0_26] : memref<8x8x8xf32, #tpu.memory_space<vmem>>, vector<8x8x8xf32>
      tpu.vector_store %arg10[%c0_24, %c0_25, %c0_26], %41 {strides = array<i32>} : memref<8x8x8xf32, #tpu.memory_space<vmem>>, vector<8x8x8xf32>,
      %c0_27 = arith.constant 0 : index
      %c0_28 = arith.constant 0 : index
      %c0_29 = arith.constant 0 : index
      %43 = vector.load %arg8[%c0_27, %c0_28, %c0_29] : memref<8x8x1xf32, #tpu.memory_space<vmem>>, vector<8x8x1xf32>
      tpu.vector_store %arg8[%c0_27, %c0_28, %c0_29], %24 {strides = array<i32>} : memref<8x8x1xf32, #tpu.memory_space<vmem>>, vector<8x8x1xf32>,
    } else {
    }
    %16 = arith.cmpi eq, %3, %1 : i32
    %17 = arith.extui %16 : i1 to i32
    %c0_i32_5 = arith.constant 0 : i32
    %18 = arith.cmpi ne, %17, %c0_i32_5 : i32
    scf.if %18 {
      %c0_6 = arith.constant 0 : index
      %c0_7 = arith.constant 0 : index
      %c0_8 = arith.constant 0 : index
      %19 = vector.load %arg4[%c0_6, %c0_7, %c0_8] : memref<8x8x8xbf16, #tpu.memory_space<vmem>>, vector<8x8x8xbf16>
      "tpu.trace_start"() <{level = 10 : i32, message = "gqd,gkd->gqk"}> : () -> ()
      %cst = arith.constant dense<0.000000e+00> : vector<8x8x8xf32>
      %20 = tpu.matmul %19, %10, %cst {dimension_numbers = #tpu.dot_dimension_numbers<[2], [2], [1], [1], [0, 0, 0, 1, 1, 1], [0], [0]>} : vector<8x8x8xbf16>, vector<8x8x8xbf16>, vector<8x8x8xf32> -> vector<8x8x8xf32>
      "tpu.trace_stop"() : () -> ()
      %21 = tpu.iota {dimensions = array<i32: 0>} : vector<8x8xi32>
      %22 = tpu.iota {dimensions = array<i32: 1>} : vector<8x8xi32>
      %23 = arith.cmpi sle, %22, %21 : vector<8x8xi32>
      %24 = vector.shape_cast %23 : vector<8x8xi1> to vector<1x8x8xi1>
      %cst_9 = arith.constant -1.000000e+30 : f32
      %25 = vector.shape_cast %24 : vector<1x8x8xi1> to vector<1x8x8xi1>
      %26 = vector.broadcast %25 : vector<1x8x8xi1> to vector<8x8x8xi1>
      %27 = vector.broadcast %cst_9 : f32 to vector<8x8x8xf32>
      %28 = arith.select %26, %20, %27 : vector<8x8x8xi1>, vector<8x8x8xf32>
      %c0_10 = arith.constant 0 : index
      %c0_11 = arith.constant 0 : index
      %c0_12 = arith.constant 0 : index
      %29 = vector.load %arg8[%c0_10, %c0_11, %c0_12] : memref<8x8x1xf32, #tpu.memory_space<vmem>>, vector<8x8x1xf32>
      %cst_13 = arith.constant dense<0xFF800000> : vector<8x8xf32>
      %30 = vector.multi_reduction <maximumf>, %28, %cst_13 [2] : vector<8x8x8xf32> to vector<8x8xf32>
      %31 = vector.shape_cast %30 : vector<8x8xf32> to vector<8x8x1xf32>
      %32 = arith.maximumf %29, %31 : vector<8x8x1xf32>
      %33 = arith.subf %29, %32 : vector<8x8x1xf32>
      %34 = math.exp %33 : vector<8x8x1xf32>
      %35 = vector.broadcast %32 : vector<8x8x1xf32> to vector<8x8x8xf32>
      %36 = arith.subf %28, %35 : vector<8x8x8xf32>
      %37 = math.exp %36 : vector<8x8x8xf32>
      %c0_14 = arith.constant 0 : index
      %c0_15 = arith.constant 0 : index
      %c0_16 = arith.constant 0 : index
      %38 = vector.load %arg9[%c0_14, %c0_15, %c0_16] : memref<8x8x1xf32, #tpu.memory_space<vmem>>, vector<8x8x1xf32>
      %39 = arith.mulf %34, %38 : vector<8x8x1xf32>
      %cst_17 = arith.constant dense<0.000000e+00> : vector<8x8xf32>
      %40 = vector.multi_reduction <add>, %37, %cst_17 [2] : vector<8x8x8xf32> to vector<8x8xf32>
      %41 = vector.shape_cast %40 : vector<8x8xf32> to vector<8x8x1xf32>
      %42 = arith.addf %39, %41 : vector<8x8x1xf32>
      %c0_18 = arith.constant 0 : index
      %c0_19 = arith.constant 0 : index
      %c0_20 = arith.constant 0 : index
      %43 = vector.load %arg9[%c0_18, %c0_19, %c0_20] : memref<8x8x1xf32, #tpu.memory_space<vmem>>, vector<8x8x1xf32>
      tpu.vector_store %arg9[%c0_18, %c0_19, %c0_20], %42 {strides = array<i32>} : memref<8x8x1xf32, #tpu.memory_space<vmem>>, vector<8x8x1xf32>,
      %c0_21 = arith.constant 0 : index
      %c0_22 = arith.constant 0 : index
      %c0_23 = arith.constant 0 : index
      %44 = vector.load %arg10[%c0_21, %c0_22, %c0_23] : memref<8x8x8xf32, #tpu.memory_space<vmem>>, vector<8x8x8xf32>
      %45 = vector.broadcast %34 : vector<8x8x1xf32> to vector<8x8x8xf32>
      %46 = arith.mulf %45, %44 : vector<8x8x8xf32>
      %47 = arith.truncf %37 : vector<8x8x8xf32> to vector<8x8x8xbf16>
      "tpu.trace_start"() <{level = 10 : i32, message = "gqk,gkd->gqd"}> : () -> ()
      %cst_24 = arith.constant dense<0.000000e+00> : vector<8x8x8xf32>
      %48 = tpu.matmul %47, %12, %cst_24 {dimension_numbers = #tpu.dot_dimension_numbers<[2], [1], [1], [2], [0, 0, 0, 1, 1, 2], [0], [0]>} : vector<8x8x8xbf16>, vector<8x8x8xbf16>, vector<8x8x8xf32> -> vector<8x8x8xf32>
      "tpu.trace_stop"() : () -> ()
      %49 = arith.addf %46, %48 : vector<8x8x8xf32>
      %c0_25 = arith.constant 0 : index
      %c0_26 = arith.constant 0 : index
      %c0_27 = arith.constant 0 : index
      %50 = vector.load %arg10[%c0_25, %c0_26, %c0_27] : memref<8x8x8xf32, #tpu.memory_space<vmem>>, vector<8x8x8xf32>
      tpu.vector_store %arg10[%c0_25, %c0_26, %c0_27], %49 {strides = array<i32>} : memref<8x8x8xf32, #tpu.memory_space<vmem>>, vector<8x8x8xf32>,
      %c0_28 = arith.constant 0 : index
      %c0_29 = arith.constant 0 : index
      %c0_30 = arith.constant 0 : index
      %51 = vector.load %arg8[%c0_28, %c0_29, %c0_30] : memref<8x8x1xf32, #tpu.memory_space<vmem>>, vector<8x8x1xf32>
      tpu.vector_store %arg8[%c0_28, %c0_29, %c0_30], %32 {strides = array<i32>} : memref<8x8x1xf32, #tpu.memory_space<vmem>>, vector<8x8x1xf32>,
      %c0_31 = arith.constant 0 : index
      %c0_32 = arith.constant 0 : index
      %c0_33 = arith.constant 0 : index
      %52 = vector.load %arg9[%c0_31, %c0_32, %c0_33] : memref<8x8x1xf32, #tpu.memory_space<vmem>>, vector<8x8x1xf32>
      %53 = tpu.reciprocal %52 {approx = true} : vector<8x8x1xf32> -> vector<8x8x1xf32>
      %c0_34 = arith.constant 0 : index
      %c0_35 = arith.constant 0 : index
      %c0_36 = arith.constant 0 : index
      %54 = vector.load %arg10[%c0_34, %c0_35, %c0_36] : memref<8x8x8xf32, #tpu.memory_space<vmem>>, vector<8x8x8xf32>
      %55 = vector.broadcast %53 : vector<8x8x1xf32> to vector<8x8x8xf32>
      %56 = arith.mulf %54, %55 : vector<8x8x8xf32>
      %57 = arith.truncf %56 : vector<8x8x8xf32> to vector<8x8x8xbf16>
      %c0_37 = arith.constant 0 : index
      %c0_38 = arith.constant 0 : index
      %c0_39 = arith.constant 0 : index
      %58 = vector.load %arg7[%c0_37, %c0_38, %c0_39] : memref<8x8x8xbf16, #tpu.memory_space<vmem>>, vector<8x8x8xbf16>
      tpu.vector_store %arg7[%c0_37, %c0_38, %c0_39], %57 {strides = array<i32>} : memref<8x8x8xbf16, #tpu.memory_space<vmem>>, vector<8x8x8xbf16>,
    } else {
    }
    return
  }
  func.func @transform_0(%arg0: i32, %arg1: i32, %arg2: memref<1xi32, #tpu.memory_space<smem>>, %arg3: memref<1xi32, #tpu.memory_space<smem>>) -> (i32, i32, i32) {
    %0 = arith.index_cast %arg1 : i32 to index
    %1 = memref.load %arg2[%0] : memref<1xi32, #tpu.memory_space<smem>>
    %c0_i32 = arith.constant 0 : i32
    %c0_i32_0 = arith.constant 0 : i32
    return %arg0, %1, %c0_i32 : i32, i32, i32
  }
  func.func @transform_1(%arg0: i32, %arg1: i32, %arg2: memref<1xi32, #tpu.memory_space<smem>>, %arg3: memref<1xi32, #tpu.memory_space<smem>>) -> (i32, i32, i32) {
    %c0_i32 = arith.constant 0 : i32
    %c0_i32_0 = arith.constant 0 : i32
    %c0_i32_1 = arith.constant 0 : i32
    return %arg0, %c0_i32, %c0_i32_0 : i32, i32, i32
  }
  func.func @transform_2(%arg0: i32, %arg1: i32, %arg2: memref<1xi32, #tpu.memory_space<smem>>, %arg3: memref<1xi32, #tpu.memory_space<smem>>) -> (i32, i32, i32) {
    %c0_i32 = arith.constant 0 : i32
    %c0_i32_0 = arith.constant 0 : i32
    %c0_i32_1 = arith.constant 0 : i32
    return %arg0, %c0_i32, %c0_i32_0 : i32, i32, i32
  }
  func.func @transform_3(%arg0: i32, %arg1: i32, %arg2: memref<1xi32, #tpu.memory_space<smem>>, %arg3: memref<1xi32, #tpu.memory_space<smem>>) -> (i32, i32, i32) {
    %0 = arith.index_cast %arg1 : i32 to index
    %1 = memref.load %arg2[%0] : memref<1xi32, #tpu.memory_space<smem>>
    %c0_i32 = arith.constant 0 : i32
    %c0_i32_0 = arith.constant 0 : i32
    return %arg0, %1, %c0_i32 : i32, i32, i32
  }
}

</mosaic_0001>

<bundles_post_ra>
// kernel: flash_mha_forward.2
= control target key start
LH: loop header
LB: loop body
LE: loop exit
PB: predicated region body
PF: predicated region fallthrough
CT: control target
= control target key end

     0   :  { %s770_s15 = smov 0   ;;  %s772_s16 = smov 0   ;;  %s861_s0 = inlined_call_operand.vmem [shape: f32[2,8,32], index: 0, kind: input, shape index: {}]   ;;  %s862_s1 = inlined_call_operand.vmem [shape: bf16[96,32], index: 1, kind: input, shape index: {}]   ;;  %s863_s2 = inlined_call_operand.vmem [shape: bf16[2,4,8,8], index: 2, kind: output, shape index: {0}]   ;;  %s864_s3 = inlined_call_operand.vmem [shape: bf16[2,4,8,8], index: 3, kind: output, shape index: {1}]   ;;  %s865_s4 = inlined_call_operand.vmem [shape: bf16[2,4,8,8], index: 4, kind: output, shape index: {2}]  }
   0x1   :  { %s774_s17 = smov 0  }
   0x2 LB: > { %s27_s18 = sadd.s32 1, %s726_s16  ;;  %p611_p0 = scmp.ge.s32.totalorder %s730_s17, 1  ;;  %s730_s17 = sphi %s774_s17, %s15_s17   ;;  %s726_s16 = sphi %s772_s16, %s867_s16   ;;  %s722_s15 = sphi %s770_s15, %s866_s15  }
   0x3   : > { %p29_p1 = scmp.ge.s32.totalorder %s27_s18, 2  ;;  %p189_p2 = scmp.lt.s32.totalorder %s730_s17, 3 }
   0x5   : > { %s869_s18 = smov (%p29_p1, %s27_s18), 0  ;;  %p190_p3 = pnand %p611_p0, %p189_p2 }
   0x6   : > { %p236_p4 = scmp.lt.s32.totalorder (!%p190_p3), %s722_s15, 1  ;;  %s734_s13 = smov (!%p190_p3), 120  }
   0x7   : > { %193 = sbr.rel (%p190_p3) target bundleno = 392 (0x188), region = 28  ;;  %s735_s14 = smov (!%p190_p3), 96  }
   0x8   : > { %s737_s19 = smov (!%p190_p3), 64   ;;  %s738_s20 = smov (!%p190_p3), 112  }
   0x9   : > { %s739_s21 = smov (!%p190_p3), 56   ;;  %s740_s22 = smov (!%p190_p3), 48  }
   0xa   : > { %s741_s23 = smov (!%p190_p3), 80   ;;  %s742_s24 = smov (!%p190_p3), 72  }
   0xb   : > { %s743_s25 = smov (!%p190_p3), 104   ;;  %s744_s26 = smov (!%p190_p3), 40  }
   0xc   : > { %v702_v0 = vld [vmem:[%s862_s1 + $0x28] sm:$0xff]   ;;  %v732_v1 = vmov 0.0   ;;  %vm312_vm0 = vcmask 261120   ;;  %v703_v3 = vld [vmem:[%s862_s1 + $0x20] sm:$0xff]   ;;  %vm733_vm1 = vmmov 0   ;;  %v704_v5 = vld [vmem:[%s862_s1 + $0x18] sm:$0xff]  }
   0xd   : > { %649 = vmatprep.subr.bf16.mxu0 %v732_v1  ;;  %v332_v2 = vsel %vm312_vm0, %v702_v0, 0  ;;  %661 = vmatprep.mubr.msk.bf16.mxu0 %vm733_vm1, %v732_v1  ;;  %v329_v4 = vsel %vm312_vm0, %v703_v3, 0  ;;  %v326_v6 = vsel %vm312_vm0, %v704_v5, 0  ;;  %v705_v7 = vld [vmem:[%s862_s1 + $0x10] sm:$0xff]   ;;  %v706_v9 = vld [vmem:[%s862_s1 + $0x8] sm:$0xff]   ;;  %s871_s15 = smov (!%p236_p4, %s722_s15), 1 }
   0xe   : > { %650 = vmatpush3.bf16.xpose.msra.mxu0 %v332_v2  ;;  %v323_v8 = vsel %vm312_vm0, %v705_v7, 0  ;;  %v320_v10 = vsel %vm312_vm0, %v706_v9, 0  ;;  %v707_v11 = vld [vmem:[%s862_s1] sm:$0xff]   ;;  %s612_s5 = sshll.u32 %s871_s15, 3  ;;  %s820_s9 = sshll.u32 %s871_s15, 4  ;;  %vm375_vm2 = vcmask 60416  }
   0xf   : > { %651 = vmatprep.subr.bf16.mxu0 %v732_v1  ;;  %v317_v12 = vsel %vm312_vm0, %v707_v11, 0  ;;  %s242_s8 = scalar_lea.vmem %s861_s0, %s612_s5  ;;  %s826_s12 = scalar_lea.vmem %s863_s2, %s820_s9 }
  0x10   : > { %v268_v13 = vld [vmem:[%s242_s8] sm:$0xff]  ;;  %s736_s15 = smov 88   ;;  %s258_s29 = scalar_lea.vmem %s864_s3, %s820_s9 }
  0x11   : > { %v269_v14 = vpack.c.bf16 %v268_v13, %v268_v13  ;;  %s266_s6 = scalar_lea.vmem %s865_s4, %s820_s9 }
  0x16   : > { %652 = vmatpush3.bf16.xpose.msra.mxu0 %v329_v4 }
  0x17   : > { %653 = vmatprep.subr.bf16.mxu0 %v732_v1 }
  0x1e   : > { %654 = vmatpush3.bf16.xpose.msra.mxu0 %v326_v6 }
  0x1f   : > { %655 = vmatprep.subr.bf16.mxu0 %v732_v1 }
  0x26   : > { %656 = vmatpush3.bf16.xpose.msra.mxu0 %v323_v8 }
  0x27   : > { %657 = vmatprep.subr.bf16.mxu0 %v732_v1 }
  0x2e   : > { %658 = vmatpush3.bf16.xpose.msra.mxu0 %v320_v10 }
  0x2f   : > { %659 = vmatprep.subr.bf16.mxu0 %v732_v1 }
  0x36   : > { %660 = vmatpush3.bf16.xpose.msra.mxu0 %v317_v12 }
  0x3d   : > { %662 = vmatmul.mubr.msk.bf16.vlgmr.msra.gmra.mxu0 %vm312_vm0, %v269_v14 }
  0xfd   : > { %v368_v15 = vpop.f32.mrf.mxu0 }
  0xfe   : > { %v374_v16 = vpack.c.bf16 %v368_v15, %v368_v15 }
  0xff   : > { %v663_v17 = vpop.f32.mrf.mxu0 }
 0x100   : > { %388 = vrot.lane.b32.xlu1 %v374_v16, %s734_s13  ;;  %380 = vrot.lane.b32.xlu0 %v374_v16, %s735_s14  ;;  %376 = vst.msk [vmem:[%s826_s12] sm:$0xf] %vm375_vm2, %v374_v16 }
 0x101   : > { %v371_v18 = vpop.f32.mrf.mxu0 }
 0x103   : > { %v664_v19 = vpop.f32.mrf.mxu0 }
 0x104   : > { %393 = vrot.lane.b32.xlu1 %v374_v16, %s736_s15  ;;  %384 = vrot.lane.b32.xlu0 %v374_v16, %s737_s19 }
 0x108   : > { %403 = vrot.lane.b32.xlu1 %v374_v16, %s738_s20  ;;  %398 = vrot.lane.b32.xlu0 %v374_v16, %s739_s21 }
 0x10c   : > { %413 = vrot.lane.b32.xlu1 %v374_v16, %s740_s22  ;;  %408 = vrot.lane.b32.xlu0 %v374_v16, %s741_s23 }
 0x110   : > { %423 = vrot.lane.b32.xlu1 %v374_v16, %s742_s24  ;;  %418 = vrot.lane.b32.xlu0 %v374_v16, %s743_s25 }
 0x114   : > { %428 = vrot.lane.b32.xlu0 %v374_v16, %s744_s26 }
 0x172   : > { %v389_v20 = vpop.permute.xlu1 %388  ;;  %v381_v21 = vpop.permute.xlu0 %380 }
 0x173   : > { %627 = vst.msk [vmem:[%s826_s12 + $0x4] sm:$0xf] %vm375_vm2, %v389_v20  ;;  %383 = vst.msk [vmem:[%s258_s29] sm:$0xf] %vm375_vm2, %v381_v21 }
 0x176   : > { %v394_v22 = vpop.permute.xlu1 %393  ;;  %v385_v23 = vpop.permute.xlu0 %384 }
 0x177   : > { %628 = vst.msk [vmem:[%s258_s29 + $0x4] sm:$0xf] %vm375_vm2, %v394_v22  ;;  %387 = vst.msk [vmem:[%s266_s6] sm:$0xf] %vm375_vm2, %v385_v23 }
 0x17a   : > { %v404_v24 = vpop.permute.xlu1 %403  ;;  %v399_v25 = vpop.permute.xlu0 %398 }
 0x17b   : > { %630 = vst.msk [vmem:[%s826_s12 + $0x8] sm:$0xf] %vm375_vm2, %v404_v24  ;;  %629 = vst.msk [vmem:[%s266_s6 + $0x4] sm:$0xf] %vm375_vm2, %v399_v25 }
 0x17e   : > { %v414_v26 = vpop.permute.xlu1 %413  ;;  %v409_v27 = vpop.permute.xlu0 %408 }
 0x17f   : > { %632 = vst.msk [vmem:[%s266_s6 + $0x8] sm:$0xf] %vm375_vm2, %v414_v26  ;;  %631 = vst.msk [vmem:[%s258_s29 + $0x8] sm:$0xf] %vm375_vm2, %v409_v27 }
 0x182   : > { %v424_v28 = vpop.permute.xlu1 %423  ;;  %v419_v29 = vpop.permute.xlu0 %418 }
 0x183   : > { %634 = vst.msk [vmem:[%s258_s29 + $0xc] sm:$0xf] %vm375_vm2, %v424_v28  ;;  %633 = vst.msk [vmem:[%s826_s12 + $0xc] sm:$0xf] %vm375_vm2, %v419_v29 }
 0x186   : > { %v429_v30 = vpop.permute.xlu0 %428 }
 0x187   : > { %635 = vst.msk [vmem:[%s266_s6 + $0xc] sm:$0xf] %vm375_vm2, %v429_v30 }
 0x188 PF: > { %s15_s17 = sadd.s32 1, %s730_s17   ;;  %s866_s15 = smov %s726_s16 }
 0x189   : > { %p12_p5 = scmp.ge.s32.totalorder %s15_s17, 4   ;;  %s867_s16 = smov %s869_s18 }
 0x18b   :  { %14 = sbr.rel (!%p12_p5) target bundleno = 2 (0x2), region = 91 }

// kernel: flash_mha_forward.3
= control target key start
LH: loop header
LB: loop body
LE: loop exit
PB: predicated region body
PF: predicated region fallthrough
CT: control target
= control target key end

     0   :  { %s3348_s0 = inlined_call_operand.<no memory space> [shape: s32[1], index: 0, kind: input, shape index: {}, may-alias: {0,1}]   ;;  %s3349_s1 = inlined_call_operand.<no memory space> [shape: s32[1], index: 1, kind: input, shape index: {}, may-alias: {0,1}]   ;;  %s3350_s3 = inlined_call_operand.vmem [shape: bf16[8,8,8], index: 3, kind: input, shape index: {}]   ;;  %s3351_s4 = inlined_call_operand.vmem [shape: bf16[8,8,8], index: 4, kind: input, shape index: {}]   ;;  %s3352_s2 = inlined_call_operand.vmem [shape: bf16[8,8,8], index: 2, kind: input, shape index: {}]   ;;  %s3353_s5 = inlined_call_operand.vmem [shape: bf16[8,8,8], index: 5, kind: output, shape index: {}]  }
   0x1   :  { %p35_p0 = scmp.lt.s32.totalorder %s3348_s0, 0  ;;  %p2287_p1 = scmp.ne.s32.totalorder %s3349_s1, 0 }
   0x3   :  { %s36_s22 = scalar_select %p35_p0, %s3348_s0, 0 }
   0x4   :  { %52 = sbr.rel (%p2287_p1) target bundleno = 22 (0x16), region = 17 }
   0x5   :  { %s2285_s23 = sshll.u32 %s36_s22, 2 }
   0x6   :  { %s2720_s26 = scalar_lea.vmem %s3352_s2, %s2285_s23  ;;  %s2725_s29 = scalar_lea.vmem %s3353_s5, %s2285_s23 }
   0x9   :  { %vm53_vm0 = vcmask 7168   ;;  %vm70_vm1 = vcmask 64512   ;;  %v2673_v0 = vmov -1e+30   ;;  %v2674_v1 = vmov 0.0  }
   0xa   :  { %54 = vst.msk [vmem:[#allocation2] sm:$0xff] %vm53_vm0, %v2673_v0  ;;  %55 = vst.msk [vmem:[#allocation2 + $0x8] sm:$0xff] %vm53_vm0, %v2673_v0 }
   0xb   :  { %56 = vst.msk [vmem:[#allocation2 + $0x10] sm:$0xff] %vm53_vm0, %v2673_v0  ;;  %57 = vst.msk [vmem:[#allocation2 + $0x18] sm:$0xff] %vm53_vm0, %v2673_v0 }
   0xc   :  { %58 = vst.msk [vmem:[#allocation2 + $0x20] sm:$0xff] %vm53_vm0, %v2673_v0  ;;  %59 = vst.msk [vmem:[#allocation2 + $0x28] sm:$0xff] %vm53_vm0, %v2673_v0 }
   0xd   :  { %60 = vst.msk [vmem:[#allocation2 + $0x30] sm:$0xff] %vm53_vm0, %v2673_v0  ;;  %61 = vst.msk [vmem:[#allocation2 + $0x38] sm:$0xff] %vm53_vm0, %v2673_v0 }
   0xe   :  { %62 = vst.msk [vmem:[#allocation3] sm:$0xff] %vm53_vm0, %v2674_v1  ;;  %63 = vst.msk [vmem:[#allocation3 + $0x8] sm:$0xff] %vm53_vm0, %v2674_v1 }
   0xf   :  { %64 = vst.msk [vmem:[#allocation3 + $0x10] sm:$0xff] %vm53_vm0, %v2674_v1  ;;  %65 = vst.msk [vmem:[#allocation3 + $0x18] sm:$0xff] %vm53_vm0, %v2674_v1 }
  0x10   :  { %66 = vst.msk [vmem:[#allocation3 + $0x20] sm:$0xff] %vm53_vm0, %v2674_v1  ;;  %67 = vst.msk [vmem:[#allocation3 + $0x28] sm:$0xff] %vm53_vm0, %v2674_v1 }
  0x11   :  { %68 = vst.msk [vmem:[#allocation3 + $0x30] sm:$0xff] %vm53_vm0, %v2674_v1  ;;  %69 = vst.msk [vmem:[#allocation3 + $0x38] sm:$0xff] %vm53_vm0, %v2674_v1 }
  0x12   :  { %71 = vst.msk [vmem:[#allocation4] sm:$0xff] %vm70_vm1, %v2674_v1  ;;  %72 = vst.msk [vmem:[#allocation4 + $0x8] sm:$0xff] %vm70_vm1, %v2674_v1 }
  0x13   :  { %73 = vst.msk [vmem:[#allocation4 + $0x10] sm:$0xff] %vm70_vm1, %v2674_v1  ;;  %74 = vst.msk [vmem:[#allocation4 + $0x18] sm:$0xff] %vm70_vm1, %v2674_v1 }
  0x14   :  { %75 = vst.msk [vmem:[#allocation4 + $0x20] sm:$0xff] %vm70_vm1, %v2674_v1  ;;  %76 = vst.msk [vmem:[#allocation4 + $0x28] sm:$0xff] %vm70_vm1, %v2674_v1 }
  0x15   :  { %77 = vst.msk [vmem:[#allocation4 + $0x30] sm:$0xff] %vm70_vm1, %v2674_v1  ;;  %78 = vst.msk [vmem:[#allocation4 + $0x38] sm:$0xff] %vm70_vm1, %v2674_v1 }
  0x16 PF:  { %s2288_s7 = sshll.u32 %s3349_s1, 3  ;;  %p2291_p2 = scmp.ge.s32.totalorder %s3349_s1, %s3348_s0 }
  0x17   :  { %s80_s8 = sshra.s32 %s2288_s7, 3 }
  0x18   :  { %s2289_s9 = sshll.u32 %s80_s8, 2 }
  0x19   :  { %s83_s12 = scalar_lea.vmem %s3350_s3, %s2289_s9  ;;  %s93_s15 = scalar_lea.vmem %s3351_s4, %s2289_s9 }
  0x1a   :  { %v2763_v2 = vld [vmem:[%s83_s12] sm:$0xf]  ;;  %v2765_v3 = vld [vmem:[%s83_s12 + $0x4] sm:$0xf]  ;;  %v2767_v4 = vld [vmem:[%s83_s12 + $0x8] sm:$0xf] }
  0x1b   :  { %v2769_v5 = vld [vmem:[%s83_s12 + $0xc] sm:$0xf]  ;;  %v2771_v6 = vld [vmem:[%s83_s12 + $0x10] sm:$0xf]  ;;  %v2773_v7 = vld [vmem:[%s83_s12 + $0x14] sm:$0xf] }
  0x1c   :  { %v2775_v8 = vld [vmem:[%s83_s12 + $0x18] sm:$0xf]  ;;  %v2777_v9 = vld [vmem:[%s83_s12 + $0x1c] sm:$0xf]  ;;  %v2779_v10 = vld [vmem:[%s93_s15] sm:$0xf] }
  0x1d   :  { %v2781_v11 = vld [vmem:[%s93_s15 + $0x4] sm:$0xf]  ;;  %v2783_v12 = vld [vmem:[%s93_s15 + $0x8] sm:$0xf]  ;;  %v2785_v13 = vld [vmem:[%s93_s15 + $0xc] sm:$0xf] }
  0x1e   :  { %v2787_v14 = vld [vmem:[%s93_s15 + $0x10] sm:$0xf]  ;;  %v2789_v15 = vld [vmem:[%s93_s15 + $0x14] sm:$0xf]  ;;  %v2791_v16 = vld [vmem:[%s93_s15 + $0x18] sm:$0xf] }
  0x1f   :  { %v2793_v17 = vld [vmem:[%s93_s15 + $0x1c] sm:$0xf]  ;;  %105 = sbr.rel (%p2291_p2) target bundleno = 750 (0x2ee), region = 21 }
  0x24   :  { %vm114_vm2 = vcmask 64512   ;;  %v2675_v18 = vmov 0.0   ;;  %vm2676_vm3 = vmmov 0   ;;  %v106_v21 = vld [vmem:[%s2720_s26] sm:$0xf]  ;;  %v2677_v53 = vmov 0  }
  0x25   :  { %2389 = vmatprep.subr.bf16.mxu0 %v2675_v18  ;;  %2395 = vmatprep.subr.bf16.mxu1 %v2675_v18  ;;  %v119_v19 = vsel %vm114_vm2, %v2763_v2, 0  ;;  %v165_v20 = vsel %vm114_vm2, %v2765_v3, 0  ;;  %v107_v22 = vld [vmem:[%s2720_s26 + $0x4] sm:$0xf]  ;;  %v211_v23 = vsel %vm114_vm2, %v2767_v4, 0  ;;  %v257_v24 = vsel %vm114_vm2, %v2769_v5, 0 }
  0x26   :  { %2390 = vmatpush3.bf16.xpose.msra.mxu0 %v119_v19  ;;  %2396 = vmatpush3.bf16.xpose.msra.mxu1 %v165_v20  ;;  %v108_v25 = vld [vmem:[%s2720_s26 + $0x8] sm:$0xf]  ;;  %v109_v26 = vld [vmem:[%s2720_s26 + $0xc] sm:$0xf]  ;;  %v303_v27 = vsel %vm114_vm2, %v2771_v6, 0  ;;  %v349_v28 = vsel %vm114_vm2, %v2773_v7, 0 }
  0x27   :  { %2391 = vmatprep.mubr.msk.bf16.mxu0 %vm2676_vm3, %v2675_v18  ;;  %2397 = vmatprep.mubr.msk.bf16.mxu1 %vm2676_vm3, %v2675_v18  ;;  %v110_v29 = vld [vmem:[%s2720_s26 + $0x10] sm:$0xf]  ;;  %v111_v30 = vld [vmem:[%s2720_s26 + $0x14] sm:$0xf]  ;;  %v395_v31 = vsel %vm114_vm2, %v2775_v8, 0  ;;  %v441_v32 = vsel %vm114_vm2, %v2777_v9, 0 }
  0x28   :  { %2401 = vmatprep.subr.bf16.mxu0 %v2675_v18  ;;  %2407 = vmatprep.subr.bf16.mxu1 %v2675_v18  ;;  %v112_v33 = vld [vmem:[%s2720_s26 + $0x18] sm:$0xf]  ;;  %v113_v34 = vld [vmem:[%s2720_s26 + $0x1c] sm:$0xf]  ;;  %vm659_vm4 = vcmask 7168   ;;  %vm735_vm5 = vcmask 1043456  }
  0x29   :  { %2589 = vset.pattern.permute.xlu0 %v2677_v53  ;;  %2590 = vset.pattern.permute.xlu1 %v2677_v53 }
  0x2d   :  { %2392 = vmatmul.mubr.msk.bf16.vlgmr.msra.gmra.mxu0 %vm114_vm2, %v106_v21  ;;  %2398 = vmatmul.mubr.msk.bf16.vlgmr.msra.gmra.mxu1 %vm114_vm2, %v107_v22 }
  0x2e   :  { %2402 = vmatpush3.bf16.xpose.msra.mxu0 %v211_v23  ;;  %2408 = vmatpush3.bf16.xpose.msra.mxu1 %v257_v24 }
  0x2f   :  { %2403 = vmatprep.mubr.msk.bf16.mxu0 %vm2676_vm3, %v2675_v18  ;;  %2409 = vmatprep.mubr.msk.bf16.mxu1 %vm2676_vm3, %v2675_v18 }
  0x30   :  { %2413 = vmatprep.subr.bf16.mxu0 %v2675_v18  ;;  %2419 = vmatprep.subr.bf16.mxu1 %v2675_v18 }
  0x35   :  { %2404 = vmatmul.mubr.msk.bf16.vlgmr.msra.gmra.mxu0 %vm114_vm2, %v108_v25  ;;  %2410 = vmatmul.mubr.msk.bf16.vlgmr.msra.gmra.mxu1 %vm114_vm2, %v109_v26 }
  0x36   :  { %2414 = vmatpush3.bf16.xpose.msra.mxu0 %v303_v27  ;;  %2420 = vmatpush3.bf16.xpose.msra.mxu1 %v349_v28 }
  0x37   :  { %2415 = vmatprep.mubr.msk.bf16.mxu0 %vm2676_vm3, %v2675_v18  ;;  %2421 = vmatprep.mubr.msk.bf16.mxu1 %vm2676_vm3, %v2675_v18 }
  0x38   :  { %2425 = vmatprep.subr.bf16.mxu0 %v2675_v18  ;;  %2431 = vmatprep.subr.bf16.mxu1 %v2675_v18 }
  0x3d   :  { %2416 = vmatmul.mubr.msk.bf16.vlgmr.msra.gmra.mxu0 %vm114_vm2, %v110_v29  ;;  %2422 = vmatmul.mubr.msk.bf16.vlgmr.msra.gmra.mxu1 %vm114_vm2, %v111_v30  ;;  %v483_v29 = vld [vmem:[#allocation2] sm:$0xff] }
  0x3e   :  { %2426 = vmatpush3.bf16.xpose.msra.mxu0 %v395_v31  ;;  %2432 = vmatpush3.bf16.xpose.msra.mxu1 %v441_v32  ;;  %v484_v32 = vld [vmem:[#allocation2 + $0x8] sm:$0xff] }
  0x3f   :  { %2427 = vmatprep.mubr.msk.bf16.mxu0 %vm2676_vm3, %v2675_v18  ;;  %2433 = vmatprep.mubr.msk.bf16.mxu1 %vm2676_vm3, %v2675_v18 }
  0x40   :  { %2437 = vmatprep.subr.bf16.mxu0 %v2675_v18  ;;  %2443 = vmatprep.subr.bf16.mxu1 %v2675_v18 }
  0x45   :  { %2428 = vmatmul.mubr.msk.bf16.vlgmr.msra.gmra.mxu0 %vm114_vm2, %v112_v33  ;;  %2434 = vmatmul.mubr.msk.bf16.vlgmr.msra.gmra.mxu1 %vm114_vm2, %v113_v34 }
  0x46   :  { %2439 = vmatprep.mubr.msk.bf16.mxu0 %vm2676_vm3, %v2675_v18  ;;  %2445 = vmatprep.mubr.msk.bf16.mxu1 %vm2676_vm3, %v2675_v18 }
  0xed   :  { %v2863_v35 = vpop.f32.mrf.mxu0  ;;  %v2865_v36 = vpop.f32.mrf.mxu1 }
  0xee   :  { %v491_v37 = vsel %vm114_vm2, %v2863_v35, -inf  ;;  %v494_v40 = vsel %vm114_vm2, %v2865_v36, -inf }
  0xef   :  { %v2399_v38 = vpop.f32.mrf.mxu1  ;;  %492 = vmax.xlane.f32.xlu0 %v491_v37  ;;  %v2393_v39 = vpop.f32.mrf.mxu0 }
  0xf0   :  { %v485_v39 = vld [vmem:[#allocation2 + $0x10] sm:$0xff] }
  0xf1   :  { %v158_v41 = vpop.f32.mrf.mxu0  ;;  %v204_v42 = vpop.f32.mrf.mxu1 }
  0xf2   :  { %v486_v42 = vld [vmem:[#allocation2 + $0x18] sm:$0xff] }
  0xf3   :  { %v2400_v43 = vpop.f32.mrf.mxu1  ;;  %495 = vmax.xlane.f32.xlu0 %v494_v40  ;;  %v2394_v44 = vpop.f32.mrf.mxu0 }
  0xf5   :  { %v2871_v45 = vpop.f32.mrf.mxu0  ;;  %v2873_v46 = vpop.f32.mrf.mxu1 }
  0xf6   :  { %v497_v47 = vsel %vm114_vm2, %v2871_v45, -inf  ;;  %v500_v50 = vsel %vm114_vm2, %v2873_v46, -inf }
  0xf7   :  { %v2411_v48 = vpop.f32.mrf.mxu1  ;;  %498 = vmax.xlane.f32.xlu1 %v497_v47  ;;  %v2405_v49 = vpop.f32.mrf.mxu0 }
  0xf8   :  { %v488_v48 = vld [vmem:[#allocation2 + $0x28] sm:$0xff]  ;;  %v487_v49 = vld [vmem:[#allocation2 + $0x20] sm:$0xff] }
  0xf9   :  { %v250_v51 = vpop.f32.mrf.mxu0  ;;  %v296_v52 = vpop.f32.mrf.mxu1 }
  0xfb   :  { %v2412_v54 = vpop.f32.mrf.mxu1  ;;  %501 = vmax.xlane.f32.xlu1 %v500_v50  ;;  %v2406_v55 = vpop.f32.mrf.mxu0 }
  0xfc   :  { %v737_v54 = vsel %vm735_vm5, %v2779_v10, 0 }
  0xfd   :  { %v2879_v56 = vpop.f32.mrf.mxu0  ;;  %v2881_v57 = vpop.f32.mrf.mxu1  ;;  %2438 = vmatpush3.bf16.msra.mxu0 %v737_v54 }
  0xfe   :  { %v506_v58 = vsel %vm114_vm2, %v2881_v57, -inf  ;;  %v503_v59 = vsel %vm114_vm2, %v2879_v56, -inf  ;;  %2449 = vmatprep.subr.bf16.mxu0 %v2675_v18 }
  0xff   :  { %v2423_v60 = vpop.f32.mrf.mxu1  ;;  %507 = vmax.xlane.f32.xlu1 %v506_v58  ;;  %504 = vmax.xlane.f32.xlu0 %v503_v59  ;;  %v2417_v61 = vpop.f32.mrf.mxu0 }
 0x101   :  { %v342_v62 = vpop.f32.mrf.mxu0  ;;  %v388_v63 = vpop.f32.mrf.mxu1 }
 0x102   :  { %v783_v62 = vsel %vm735_vm5, %v2781_v11, 0 }
 0x103   :  { %v2418_v0 = vpop.f32.mrf.mxu0  ;;  %v2424_v1 = vpop.f32.mrf.mxu1  ;;  %2444 = vmatpush3.bf16.msra.mxu1 %v783_v62  ;;  %v875_v62 = vsel %vm735_vm5, %v2785_v13, 0 }
 0x104   :  { %2455 = vmatprep.subr.bf16.mxu1 %v2675_v18 }
 0x105   :  { %v2887_v19 = vpop.f32.mrf.mxu0  ;;  %v2889_v20 = vpop.f32.mrf.mxu1 }
 0x106   :  { %v509_v21 = vsel %vm114_vm2, %v2887_v19, -inf  ;;  %v512_v22 = vsel %vm114_vm2, %v2889_v20, -inf }
 0x107   :  { %v2435_v23 = vpop.f32.mrf.mxu1  ;;  %510 = vmax.xlane.f32.xlu0 %v509_v21  ;;  %v2429_v24 = vpop.f32.mrf.mxu0  ;;  %513 = vmax.xlane.f32.xlu1 %v512_v22  ;;  %v2910_v22 = vld [vmem:[#allocation2 + $0x30] sm:$0xff] }
 0x108   :  { %v2912_v23 = vld [vmem:[#allocation2 + $0x38] sm:$0xff] }
 0x109   :  { %v434_v25 = vpop.f32.mrf.mxu0  ;;  %v480_v26 = vpop.f32.mrf.mxu1 }
 0x10b   :  { %v2436_v27 = vpop.f32.mrf.mxu1  ;;  %v2430_v28 = vpop.f32.mrf.mxu0 }
 0x178   :  { %v493_v30 = vpop.xlane.xlu0 %492 }
 0x179   :  { %v515_v31 = vmax.f32 %v483_v29, %v493_v30 }
 0x17b   :  { %v523_v33 = vsub.f32 %v483_v29, %v515_v31  ;;  %1117 = vst.msk [vmem:[#allocation2] sm:$0xff] %vm659_vm4, %v515_v31  ;;  %549 = vperm.xlu0 %2589, %v515_v31  }
 0x17c   :  { %v496_v34 = vpop.xlane.xlu0 %495 }
 0x17d   :  { %v531_v37 = vmul.f32 1.442695, %v523_v33  ;;  %v516_v38 = vmax.f32 %v484_v32, %v496_v34 }
 0x17f   :  { %2591 = vpow2.f32 %v531_v37  ;;  %1118 = vst.msk [vmem:[#allocation2 + $0x8] sm:$0xff] %vm659_vm4, %v516_v38  ;;  %554 = vperm.xlu1 %2590, %v516_v38   ;;  %v524_v43 = vsub.f32 %v484_v32, %v516_v38 }
 0x180   :  { %v499_v40 = vpop.xlane.xlu1 %498 }
 0x181   :  { %v517_v41 = vmax.f32 %v485_v39, %v499_v40  ;;  %v533_v51 = vmul.f32 1.442695, %v524_v43 }
 0x183   :  { %1119 = vst.msk [vmem:[#allocation2 + $0x10] sm:$0xff] %vm659_vm4, %v517_v41  ;;  %559 = vperm.xlu1 %2590, %v517_v41   ;;  %v525_v55 = vsub.f32 %v485_v39, %v517_v41 }
 0x184   :  { %v502_v44 = vpop.xlane.xlu1 %501 }
 0x185   :  { %v518_v47 = vmax.f32 %v486_v42, %v502_v44  ;;  %v535_v0 = vmul.f32 1.442695, %v525_v55 }
 0x187   :  { %v526_v50 = vsub.f32 %v486_v42, %v518_v47  ;;  %1120 = vst.msk [vmem:[#allocation2 + $0x18] sm:$0xff] %vm659_vm4, %v518_v47  ;;  %564 = vperm.xlu1 %2590, %v518_v47  }
 0x188   :  { %v508_v52 = vpop.xlane.xlu1 %507  ;;  %v505_v53 = vpop.xlane.xlu0 %504 }
 0x189   :  { %v537_v58 = vmul.f32 1.442695, %v526_v50  ;;  %v520_v59 = vmax.f32 %v488_v48, %v508_v52  ;;  %v519_v60 = vmax.f32 %v487_v49, %v505_v53 }
 0x18b   :  { %2593 = vpow2.f32 %v537_v58  ;;  %v528_v61 = vsub.f32 %v488_v48, %v520_v59  ;;  %1122 = vst.msk [vmem:[#allocation2 + $0x28] sm:$0xff] %vm659_vm4, %v520_v59  ;;  %1121 = vst.msk [vmem:[#allocation2 + $0x20] sm:$0xff] %vm659_vm4, %v519_v60  ;;  %569 = vperm.xlu1 %2590, %v519_v60   ;;  %v527_v21 = vsub.f32 %v487_v49, %v519_v60  ;;  %v829_v58 = vsel %vm735_vm5, %v2783_v12, 0 }
 0x18c   :  { %v2906_v63 = vpop.eup %2591  ;;  %2595 = vpow2.f32 %v533_v51 }
 0x18d   :  { %v541_v1 = vmul.f32 1.442695, %v528_v61  ;;  %678 = vperm.xlu0 %2589, %v2906_v63   ;;  %v539_v26 = vmul.f32 1.442695, %v527_v21 }
 0x18f   :  { %2597 = vpow2.f32 %v541_v1  ;;  %574 = vperm.xlu1 %2590, %v520_v59  }
 0x190   :  { %v511_v24 = vpop.xlane.xlu0 %510  ;;  %v514_v25 = vpop.xlane.xlu1 %513  ;;  %2599 = vpow2.f32 %v535_v0 }
 0x191   :  { %v2915_v27 = vmax.f32 %v2910_v22, %v511_v24  ;;  %v2918_v28 = vmax.f32 %v2912_v23, %v514_v25  ;;  %2601 = vpow2.f32 %v539_v26  ;;  %v921_v26 = vsel %vm735_vm5, %v2787_v14, 0 }
 0x193   :  { %v529_v29 = vsub.f32 %v2910_v22, %v2915_v27  ;;  %1123 = vst.msk [vmem:[#allocation2 + $0x30] sm:$0xff] %vm659_vm4, %v2915_v27  ;;  %579 = vperm.xlu1 %2590, %v2915_v27   ;;  %v530_v30 = vsub.f32 %v2912_v23, %v2918_v28  ;;  %1124 = vst.msk [vmem:[#allocation2 + $0x38] sm:$0xff] %vm659_vm4, %v2918_v28 }
 0x197   :  { %584 = vperm.xlu1 %2590, %v2918_v28  }
 0x198   :  { %v2930_v31 = vpop.eup %2593 }
 0x199   :  { %693 = vperm.xlu0 %2589, %v2930_v31   ;;  %v2933_v32 = vpop.eup %2595 }
 0x19b   :  { %683 = vperm.xlu1 %2590, %v2933_v32  }
 0x19c   :  { %v2936_v33 = vpop.eup %2597 }
 0x19d   :  { %703 = vperm.xlu0 %2589, %v2936_v33   ;;  %v2939_v34 = vpop.eup %2599 }
 0x19e   :  { %v2942_v37 = vpop.eup %2601 }
 0x19f   :  { %688 = vperm.xlu1 %2590, %v2939_v34  }
 0x1a3   :  { %698 = vperm.xlu1 %2590, %v2942_v37  }
 0x1f6   :  { %v550_v38 = vpop.permute.xlu0 %549 }
 0x1f7   :  { %v587_v39 = vsub.f32 %v2863_v35, %v550_v38 }
 0x1f9   :  { %v595_v40 = vmul.f32 1.442695, %v587_v39 }
 0x1fa   :  { %v555_v41 = vpop.permute.xlu1 %554 }
 0x1fb   :  { %2603 = vpow2.f32 %v595_v40  ;;  %v588_v42 = vsub.f32 %v2865_v36, %v555_v41 }
 0x1fd   :  { %v597_v43 = vmul.f32 1.442695, %v588_v42 }
 0x1fe   :  { %v560_v44 = vpop.permute.xlu1 %559 }
 0x1ff   :  { %2605 = vpow2.f32 %v597_v43  ;;  %v589_v47 = vsub.f32 %v2871_v45, %v560_v44  ;;  %v967_v43 = vsel %vm735_vm5, %v2789_v15, 0 }
 0x201   :  { %v599_v48 = vmul.f32 1.442695, %v589_v47 }
 0x202   :  { %v565_v49 = vpop.permute.xlu1 %564 }
 0x203   :  { %2607 = vpow2.f32 %v599_v48  ;;  %v590_v50 = vsub.f32 %v2873_v46, %v565_v49  ;;  %v1013_v48 = vsel %vm735_vm5, %v2791_v16, 0 }
 0x205   :  { %v601_v51 = vmul.f32 1.442695, %v590_v50 }
 0x206   :  { %v570_v52 = vpop.permute.xlu1 %569 }
 0x207   :  { %2609 = vpow2.f32 %v601_v51  ;;  %v591_v35 = vsub.f32 %v2879_v56, %v570_v52  ;;  %v1059_v52 = vsel %vm735_vm5, %v2793_v17, 0 }
 0x208   :  { %v2604_v53 = vpop.eup %2603 }
 0x209   :  { %v603_v54 = vmul.f32 1.442695, %v591_v35  ;;  %v627_v55 = vsel %vm114_vm2, %v2604_v53, 0.0  ;;  %v724_v36 = vpack.c.bf16 %v2604_v53, %v2604_v53 }
 0x20a   :  { %v575_v59 = vpop.permute.xlu1 %574  ;;  %628 = vadd.xlane.f32.xlu1 %v627_v55 }
 0x20b   :  { %2611 = vpow2.f32 %v603_v54  ;;  %v592_v45 = vsub.f32 %v2881_v57, %v575_v59  ;;  %2440 = vmatmul.mubr.msk.bf16.vlgmr.msra.gmra.mxu0 %vm114_vm2, %v724_v36  ;;  %v543_v36 = vmul.f32 1.442695, %v529_v29 }
 0x20c   :  { %v2606_v46 = vpop.eup %2605  ;;  %2450 = vmatpush3.bf16.msra.mxu0 %v829_v58  ;;  %2451 = vmatprep.mubr.msk.bf16.mxu0 %vm2676_vm3, %v2675_v18 }
 0x20d   :  { %v605_v56 = vmul.f32 1.442695, %v592_v45  ;;  %v630_v60 = vsel %vm114_vm2, %v2606_v46, 0.0  ;;  %v725_v61 = vpack.c.bf16 %v2606_v46, %v2606_v46  ;;  %2461 = vmatprep.subr.bf16.mxu0 %v2675_v18  ;;  %v545_v45 = vmul.f32 1.442695, %v530_v30 }
 0x20e   :  { %631 = vadd.xlane.f32.xlu0 %v630_v60  ;;  %v580_v0 = vpop.permute.xlu1 %579  ;;  %v679_v60 = vpop.permute.xlu0 %678 }
 0x20f   :  { %2613 = vpow2.f32 %v605_v56  ;;  %v593_v57 = vsub.f32 %v2887_v19, %v580_v0  ;;  %2446 = vmatmul.mubr.msk.bf16.vlgmr.msra.gmra.mxu1 %vm114_vm2, %v725_v61  ;;  %v611_v61 = vld [vmem:[#allocation3] sm:$0xff] }
 0x210   :  { %v2608_v1 = vpop.eup %2607  ;;  %2456 = vmatpush3.bf16.msra.mxu1 %v875_v62  ;;  %2457 = vmatprep.mubr.msk.bf16.mxu1 %vm2676_vm3, %v2675_v18  ;;  %v619_v23 = vmul.f32 %v2906_v63, %v611_v61  ;;  %v612_v62 = vld [vmem:[#allocation3 + $0x8] sm:$0xff] }
 0x211   :  { %v607_v21 = vmul.f32 1.442695, %v593_v57  ;;  %v633_v24 = vsel %vm114_vm2, %v2608_v1, 0.0  ;;  %v726_v25 = vpack.c.bf16 %v2608_v1, %v2608_v1  ;;  %2467 = vmatprep.subr.bf16.mxu1 %v2675_v18  ;;  %v620_v57 = vmul.f32 %v2933_v32, %v612_v62 }
 0x212   :  { %634 = vadd.xlane.f32.xlu0 %v633_v24  ;;  %v585_v38 = vpop.permute.xlu1 %584 }
 0x213   :  { %2615 = vpow2.f32 %v607_v21  ;;  %v594_v19 = vsub.f32 %v2889_v20, %v585_v38  ;;  %2452 = vmatmul.mubr.msk.bf16.vlgmr.msra.gmra.mxu0 %vm114_vm2, %v726_v25  ;;  %v613_v21 = vld [vmem:[#allocation3 + $0x10] sm:$0xff]  ;;  %v614_v38 = vld [vmem:[#allocation3 + $0x18] sm:$0xff] }
 0x214   :  { %v2610_v39 = vpop.eup %2609  ;;  %2462 = vmatpush3.bf16.msra.mxu0 %v921_v26  ;;  %2463 = vmatprep.mubr.msk.bf16.mxu0 %vm2676_vm3, %v2675_v18  ;;  %v3003_v27 = vpop.permute.xlu0 %693  ;;  %v621_v25 = vmul.f32 %v2939_v34, %v613_v21  ;;  %v622_v63 = vmul.f32 %v2930_v31, %v614_v38 }
 0x215   :  { %v609_v40 = vmul.f32 1.442695, %v594_v19  ;;  %v636_v41 = vsel %vm114_vm2, %v2610_v39, 0.0  ;;  %v727_v42 = vpack.c.bf16 %v2610_v39, %v2610_v39  ;;  %2473 = vmatprep.subr.bf16.mxu0 %v2675_v18 }
 0x216   :  { %637 = vadd.xlane.f32.xlu1 %v636_v41  ;;  %v684_v56 = vpop.permute.xlu1 %683 }
 0x217   :  { %2617 = vpow2.f32 %v609_v40  ;;  %2458 = vmatmul.mubr.msk.bf16.vlgmr.msra.gmra.mxu1 %vm114_vm2, %v727_v42  ;;  %v615_v40 = vld [vmem:[#allocation3 + $0x20] sm:$0xff] }
 0x218   :  { %v2612_v20 = vpop.eup %2611  ;;  %2468 = vmatpush3.bf16.msra.mxu1 %v967_v43  ;;  %2469 = vmatprep.mubr.msk.bf16.mxu1 %vm2676_vm3, %v2675_v18  ;;  %2619 = vpow2.f32 %v543_v36  ;;  %v3008_v28 = vpop.permute.xlu0 %703  ;;  %v623_v32 = vmul.f32 %v2942_v37, %v615_v40  ;;  %v616_v43 = vld [vmem:[#allocation3 + $0x28] sm:$0xff] }
 0x219   :  { %v639_v44 = vsel %vm114_vm2, %v2612_v20, 0.0  ;;  %v728_v47 = vpack.c.bf16 %v2612_v20, %v2612_v20  ;;  %2479 = vmatprep.subr.bf16.mxu1 %v2675_v18  ;;  %2621 = vpow2.f32 %v545_v45  ;;  %v624_v34 = vmul.f32 %v2936_v33, %v616_v43  ;;  %v670_v45 = vld [vmem:[#allocation4 + $0x10] sm:$0xff]  ;;  %v673_v40 = vld [vmem:[#allocation4 + $0x28] sm:$0xff] }
 0x21a   :  { %640 = vadd.xlane.f32.xlu0 %v639_v44  ;;  %v689_v22 = vpop.permute.xlu1 %688 }
 0x21b   :  { %2464 = vmatmul.mubr.msk.bf16.vlgmr.msra.gmra.mxu0 %vm114_vm2, %v728_v47  ;;  %v617_v47 = vld [vmem:[#allocation3 + $0x30] sm:$0xff] }
 0x21c   :  { %v2614_v49 = vpop.eup %2613  ;;  %2474 = vmatpush3.bf16.msra.mxu0 %v1013_v48  ;;  %2475 = vmatprep.mubr.msk.bf16.mxu0 %vm2676_vm3, %v2675_v18 }
 0x21d   :  { %v642_v50 = vsel %vm114_vm2, %v2614_v49, 0.0  ;;  %v729_v51 = vpack.c.bf16 %v2614_v49, %v2614_v49 }
 0x21e   :  { %643 = vadd.xlane.f32.xlu1 %v642_v50  ;;  %v3005_v29 = vpop.permute.xlu1 %698  ;;  %v618_v50 = vld [vmem:[#allocation3 + $0x38] sm:$0xff] }
 0x21f   :  { %2470 = vmatmul.mubr.msk.bf16.vlgmr.msra.gmra.mxu1 %vm114_vm2, %v729_v51 }
 0x220   :  { %v2616_v35 = vpop.eup %2615  ;;  %2480 = vmatpush3.bf16.msra.mxu1 %v1059_v52  ;;  %2481 = vmatprep.mubr.msk.bf16.mxu1 %vm2676_vm3, %v2675_v18 }
 0x221   :  { %v645_v53 = vsel %vm114_vm2, %v2616_v35, 0.0  ;;  %v730_v54 = vpack.c.bf16 %v2616_v35, %v2616_v35 }
 0x222   :  { %646 = vadd.xlane.f32.xlu0 %v645_v53  ;;  %v668_v53 = vld [vmem:[#allocation4] sm:$0xff] }
 0x223   :  { %2476 = vmatmul.mubr.msk.bf16.vlgmr.msra.gmra.mxu0 %vm114_vm2, %v730_v54  ;;  %v716_v54 = vmul.f32 %v679_v60, %v668_v53 }
 0x224   :  { %v2618_v55 = vpop.eup %2617 }
 0x225   :  { %v648_v58 = vsel %vm114_vm2, %v2618_v55, 0.0  ;;  %v731_v59 = vpack.c.bf16 %v2618_v55, %v2618_v55  ;;  %v2620_v18 = vpop.eup %2619  ;;  %v669_v55 = vld [vmem:[#allocation4 + $0x8] sm:$0xff] }
 0x226   :  { %649 = vadd.xlane.f32.xlu1 %v648_v58  ;;  %v2622_v46 = vpop.eup %2621  ;;  %v625_v31 = vmul.f32 %v2620_v18, %v617_v47 }
 0x227   :  { %2482 = vmatmul.mubr.msk.bf16.vlgmr.msra.gmra.mxu1 %vm114_vm2, %v731_v59  ;;  %v626_v52 = vmul.f32 %v2622_v46, %v618_v50  ;;  %v717_v59 = vmul.f32 %v684_v56, %v669_v55  ;;  %v672_v56 = vld [vmem:[#allocation4 + $0x20] sm:$0xff] }
 0x237   :  { %708 = vperm.xlu1 %2590, %v2620_v18  }
 0x238   :  { %713 = vperm.xlu0 %2589, %v2622_v46   ;;  %v718_v46 = vmul.f32 %v689_v22, %v670_v45  ;;  %v720_v22 = vmul.f32 %v3005_v29, %v672_v56 }
 0x293   :  { %v629_v30 = vpop.xlane.xlu1 %628 }
 0x294   :  { %v651_v0 = vadd.f32 %v629_v30, %v619_v23 }
 0x296   :  { %660 = vst.msk [vmem:[#allocation3] sm:$0xff] %vm659_vm4, %v651_v0  ;;  %v671_v0 = vld [vmem:[#allocation4 + $0x18] sm:$0xff] }
 0x297   :  { %v632_v1 = vpop.xlane.xlu0 %631 }
 0x298   :  { %v652_v24 = vadd.f32 %v632_v1, %v620_v57 }
 0x29a   :  { %661 = vst.msk [vmem:[#allocation3 + $0x8] sm:$0xff] %vm659_vm4, %v652_v24 }
 0x29b   :  { %v635_v26 = vpop.xlane.xlu0 %634 }
 0x29c   :  { %v653_v19 = vadd.f32 %v635_v26, %v621_v25  ;;  %v719_v25 = vmul.f32 %v3003_v27, %v671_v0  ;;  %v721_v27 = vmul.f32 %v3008_v28, %v673_v40 }
 0x29e   :  { %662 = vst.msk [vmem:[#allocation3 + $0x10] sm:$0xff] %vm659_vm4, %v653_v19 }
 0x29f   :  { %v638_v39 = vpop.xlane.xlu1 %637 }
 0x2a0   :  { %v654_v41 = vadd.f32 %v638_v39, %v622_v63 }
 0x2a2   :  { %663 = vst.msk [vmem:[#allocation3 + $0x18] sm:$0xff] %vm659_vm4, %v654_v41 }
 0x2a3   :  { %v641_v42 = vpop.xlane.xlu0 %640 }
 0x2a4   :  { %v655_v20 = vadd.f32 %v641_v42, %v623_v32 }
 0x2a6   :  { %664 = vst.msk [vmem:[#allocation3 + $0x20] sm:$0xff] %vm659_vm4, %v655_v20 }
 0x2a7   :  { %v644_v44 = vpop.xlane.xlu1 %643 }
 0x2a8   :  { %v656_v48 = vadd.f32 %v644_v44, %v624_v34  ;;  %v674_v44 = vld [vmem:[#allocation4 + $0x30] sm:$0xff] }
 0x2aa   :  { %665 = vst.msk [vmem:[#allocation3 + $0x28] sm:$0xff] %vm659_vm4, %v656_v48 }
 0x2ab   :  { %v647_v49 = vpop.xlane.xlu0 %646 }
 0x2ac   :  { %v657_v51 = vadd.f32 %v647_v49, %v625_v31 }
 0x2ae   :  { %666 = vst.msk [vmem:[#allocation3 + $0x30] sm:$0xff] %vm659_vm4, %v657_v51 }
 0x2af   :  { %v650_v37 = vpop.xlane.xlu1 %649 }
 0x2b0   :  { %v658_v35 = vadd.f32 %v650_v37, %v626_v52  ;;  %v675_v52 = vld [vmem:[#allocation4 + $0x38] sm:$0xff] }
 0x2b2   :  { %667 = vst.msk [vmem:[#allocation3 + $0x38] sm:$0xff] %vm659_vm4, %v658_v35 }
 0x2b3   :  { %v709_v34 = vpop.permute.xlu1 %708  ;;  %v714_v51 = vpop.permute.xlu0 %713 }
 0x2b4   :  { %v722_v29 = vmul.f32 %v709_v34, %v674_v44  ;;  %v723_v28 = vmul.f32 %v714_v51, %v675_v52 }
 0x2cb   :  { %v773_v33 = vpop.f32.mrf.mxu0 }
 0x2cc   :  { %v1101_v36 = vadd.f32 %v773_v33, %v716_v54 }
 0x2cd   :  { %v2441_v58 = vpop.f32.mrf.mxu0 }
 0x2ce   :  { %1109 = vst.msk [vmem:[#allocation4] sm:$0xff] %vm114_vm2, %v1101_v36 }
 0x2cf   :  { %v776_v18 = vpop.f32.mrf.mxu0  ;;  %v819_v61 = vpop.f32.mrf.mxu1 }
 0x2d0   :  { %v1102_v23 = vadd.f32 %v819_v61, %v717_v59 }
 0x2d1   :  { %v2442_v30 = vpop.f32.mrf.mxu0  ;;  %v2447_v62 = vpop.f32.mrf.mxu1 }
 0x2d2   :  { %1110 = vst.msk [vmem:[#allocation4 + $0x8] sm:$0xff] %vm114_vm2, %v1102_v23 }
 0x2d3   :  { %v822_v57 = vpop.f32.mrf.mxu1  ;;  %v865_v1 = vpop.f32.mrf.mxu0 }
 0x2d4   :  { %v1103_v60 = vadd.f32 %v865_v1, %v718_v46 }
 0x2d5   :  { %v2448_v21 = vpop.f32.mrf.mxu1  ;;  %v2453_v24 = vpop.f32.mrf.mxu0 }
 0x2d6   :  { %1111 = vst.msk [vmem:[#allocation4 + $0x10] sm:$0xff] %vm114_vm2, %v1103_v60 }
 0x2d7   :  { %v868_v26 = vpop.f32.mrf.mxu0  ;;  %v911_v38 = vpop.f32.mrf.mxu1 }
 0x2d8   :  { %v1104_v19 = vadd.f32 %v911_v38, %v719_v25 }
 0x2d9   :  { %v2454_v63 = vpop.f32.mrf.mxu0  ;;  %v2459_v39 = vpop.f32.mrf.mxu1 }
 0x2da   :  { %1112 = vst.msk [vmem:[#allocation4 + $0x18] sm:$0xff] %vm114_vm2, %v1104_v19 }
 0x2db   :  { %v914_v41 = vpop.f32.mrf.mxu1  ;;  %v957_v32 = vpop.f32.mrf.mxu0 }
 0x2dc   :  { %v1105_v42 = vadd.f32 %v957_v32, %v720_v22 }
 0x2dd   :  { %v2460_v43 = vpop.f32.mrf.mxu1  ;;  %v2465_v20 = vpop.f32.mrf.mxu0 }
 0x2de   :  { %1113 = vst.msk [vmem:[#allocation4 + $0x20] sm:$0xff] %vm114_vm2, %v1105_v42 }
 0x2df   :  { %v960_v47 = vpop.f32.mrf.mxu0  ;;  %v1003_v48 = vpop.f32.mrf.mxu1 }
 0x2e0   :  { %v1106_v31 = vadd.f32 %v1003_v48, %v721_v27 }
 0x2e1   :  { %v2466_v49 = vpop.f32.mrf.mxu0  ;;  %v2471_v50 = vpop.f32.mrf.mxu1 }
 0x2e2   :  { %1114 = vst.msk [vmem:[#allocation4 + $0x28] sm:$0xff] %vm114_vm2, %v1106_v31 }
 0x2e3   :  { %v1006_v37 = vpop.f32.mrf.mxu1  ;;  %v1049_v35 = vpop.f32.mrf.mxu0 }
 0x2e4   :  { %v1107_v53 = vadd.f32 %v1049_v35, %v722_v29 }
 0x2e5   :  { %v2472_v54 = vpop.f32.mrf.mxu1  ;;  %v2477_v55 = vpop.f32.mrf.mxu0 }
 0x2e6   :  { %1115 = vst.msk [vmem:[#allocation4 + $0x30] sm:$0xff] %vm114_vm2, %v1107_v53 }
 0x2e7   :  { %v1052_v33 = vpop.f32.mrf.mxu0  ;;  %v1095_v36 = vpop.f32.mrf.mxu1 }
 0x2e8   :  { %v1108_v58 = vadd.f32 %v1095_v36, %v723_v28 }
 0x2e9   :  { %v2478_v59 = vpop.f32.mrf.mxu0  ;;  %v2483_v45 = vpop.f32.mrf.mxu1 }
 0x2ea   :  { %1116 = vst.msk [vmem:[#allocation4 + $0x38] sm:$0xff] %vm114_vm2, %v1108_v58 }
 0x2eb   :  { %v1098_v18 = vpop.f32.mrf.mxu1 }
 0x2ed   :  { %v2484_v61 = vpop.f32.mrf.mxu1 }
 0x2ee PF:  { %p2308_p3 = scmp.ne.s32.totalorder %s3349_s1, %s3348_s0 }
 0x2f0   :  { %1128 = sbr.rel (%p2308_p3) target bundleno = 1563 (0x61b), region = 25 }
 0x2f5   :  { %vm1137_vm6 = vcmask 64512   ;;  %v2678_v23 = vmov 0.0   ;;  %vm2679_vm7 = vmmov 0   ;;  %v1129_v46 = vld [vmem:[%s2720_s26] sm:$0xf]  ;;  %v2680_v53 = vmov 0  }
 0x2f6   :  { %2485 = vmatprep.subr.bf16.mxu0 %v2678_v23  ;;  %2491 = vmatprep.subr.bf16.mxu1 %v2678_v23  ;;  %v1142_v30 = vsel %vm1137_vm6, %v2763_v2, 0  ;;  %v1188_v62 = vsel %vm1137_vm6, %v2765_v3, 0  ;;  %v1130_v2 = vld [vmem:[%s2720_s26 + $0x4] sm:$0xf]  ;;  %v1234_v3 = vsel %vm1137_vm6, %v2767_v4, 0  ;;  %v1280_v0 = vsel %vm1137_vm6, %v2769_v5, 0 }
 0x2f7   :  { %2486 = vmatpush3.bf16.xpose.msra.mxu0 %v1142_v30  ;;  %2492 = vmatpush3.bf16.xpose.msra.mxu1 %v1188_v62  ;;  %v1131_v4 = vld [vmem:[%s2720_s26 + $0x8] sm:$0xf]  ;;  %v1132_v5 = vld [vmem:[%s2720_s26 + $0xc] sm:$0xf]  ;;  %v1326_v57 = vsel %vm1137_vm6, %v2771_v6, 0  ;;  %v1372_v1 = vsel %vm1137_vm6, %v2773_v7, 0 }
 0x2f8   :  { %2487 = vmatprep.mubr.msk.bf16.mxu0 %vm2679_vm7, %v2678_v23  ;;  %2493 = vmatprep.mubr.msk.bf16.mxu1 %vm2679_vm7, %v2678_v23  ;;  %v1133_v6 = vld [vmem:[%s2720_s26 + $0x10] sm:$0xf]  ;;  %v1134_v7 = vld [vmem:[%s2720_s26 + $0x14] sm:$0xf]  ;;  %v1418_v60 = vsel %vm1137_vm6, %v2775_v8, 0  ;;  %v1464_v21 = vsel %vm1137_vm6, %v2777_v9, 0  ;;  %v1506_v9 = vlaneseq }
 0x2f9   :  { %2497 = vmatprep.subr.bf16.mxu0 %v2678_v23  ;;  %2503 = vmatprep.subr.bf16.mxu1 %v2678_v23  ;;  %v1135_v8 = vld [vmem:[%s2720_s26 + $0x18] sm:$0xf]  ;;  %v1136_v24 = vld [vmem:[%s2720_s26 + $0x1c] sm:$0xf]  ;;  %vm1697_vm9 = vcmask 7168   ;;  %vm1773_vm10 = vcmask 1043456  }
 0x2fa   :  { %v1507_v25 = vshrl.u32 %v1506_v9, 7  ;;  %v1509_v56 = vand.u32 127, %v1506_v9  ;;  %2623 = vset.pattern.permute.xlu0 %v2680_v53  ;;  %2624 = vset.pattern.permute.xlu1 %v2680_v53  ;;  %v3221_v53 = vld [vmem:[#allocation2 + $0x38] sm:$0xff]  ;;  %vm2243_vm11 = vcmask 60416  }
 0x2fc   :  { %vm3102_vm8 = vcmp.le.s32.totalorder %v1509_v56, %v1507_v25  ;;  %v3159_v25 = vld [vmem:[#allocation2 + $0x8] sm:$0xff] }
 0x2fe   :  { %2488 = vmatmul.mubr.msk.bf16.vlgmr.msra.gmra.mxu0 %vm1137_vm6, %v1129_v46  ;;  %2494 = vmatmul.mubr.msk.bf16.vlgmr.msra.gmra.mxu1 %vm1137_vm6, %v1130_v2 }
 0x2ff   :  { %2498 = vmatpush3.bf16.xpose.msra.mxu0 %v1234_v3  ;;  %2504 = vmatpush3.bf16.xpose.msra.mxu1 %v1280_v0 }
 0x300   :  { %2499 = vmatprep.mubr.msk.bf16.mxu0 %vm2679_vm7, %v2678_v23  ;;  %2505 = vmatprep.mubr.msk.bf16.mxu1 %vm2679_vm7, %v2678_v23 }
 0x301   :  { %2509 = vmatprep.subr.bf16.mxu0 %v2678_v23  ;;  %2515 = vmatprep.subr.bf16.mxu1 %v2678_v23 }
 0x306   :  { %2500 = vmatmul.mubr.msk.bf16.vlgmr.msra.gmra.mxu0 %vm1137_vm6, %v1131_v4  ;;  %2506 = vmatmul.mubr.msk.bf16.vlgmr.msra.gmra.mxu1 %vm1137_vm6, %v1132_v5 }
 0x307   :  { %2510 = vmatpush3.bf16.xpose.msra.mxu0 %v1326_v57  ;;  %2516 = vmatpush3.bf16.xpose.msra.mxu1 %v1372_v1 }
 0x308   :  { %2511 = vmatprep.mubr.msk.bf16.mxu0 %vm2679_vm7, %v2678_v23  ;;  %2517 = vmatprep.mubr.msk.bf16.mxu1 %vm2679_vm7, %v2678_v23 }
 0x309   :  { %2521 = vmatprep.subr.bf16.mxu0 %v2678_v23  ;;  %2527 = vmatprep.subr.bf16.mxu1 %v2678_v23 }
 0x30e   :  { %2512 = vmatmul.mubr.msk.bf16.vlgmr.msra.gmra.mxu0 %vm1137_vm6, %v1133_v6  ;;  %2518 = vmatmul.mubr.msk.bf16.vlgmr.msra.gmra.mxu1 %vm1137_vm6, %v1134_v7 }
 0x30f   :  { %2522 = vmatpush3.bf16.xpose.msra.mxu0 %v1418_v60  ;;  %2528 = vmatpush3.bf16.xpose.msra.mxu1 %v1464_v21 }
 0x310   :  { %2523 = vmatprep.mubr.msk.bf16.mxu0 %vm2679_vm7, %v2678_v23  ;;  %2529 = vmatprep.mubr.msk.bf16.mxu1 %vm2679_vm7, %v2678_v23 }
 0x311   :  { %2533 = vmatprep.subr.bf16.mxu0 %v2678_v23  ;;  %2539 = vmatprep.subr.bf16.mxu1 %v2678_v23 }
 0x316   :  { %2524 = vmatmul.mubr.msk.bf16.vlgmr.msra.gmra.mxu0 %vm1137_vm6, %v1135_v8  ;;  %2530 = vmatmul.mubr.msk.bf16.vlgmr.msra.gmra.mxu1 %vm1137_vm6, %v1136_v24  ;;  %v3154_v8 = vld [vmem:[#allocation2] sm:$0xff] }
 0x317   :  { %2535 = vmatprep.mubr.msk.bf16.mxu0 %vm2679_vm7, %v2678_v23  ;;  %2541 = vmatprep.mubr.msk.bf16.mxu1 %vm2679_vm7, %v2678_v23 }
 0x3be   :  { %v1178_v38 = vpop.f32.mrf.mxu0  ;;  %v1224_v19 = vpop.f32.mrf.mxu1 }
 0x3bf   :  { %v3108_v63 = vsel %vm3102_vm8, %v1178_v38, -1e+30  ;;  %v3112_v39 = vsel %vm3102_vm8, %v1224_v19, -1e+30  ;;  %v3169_v19 = vld [vmem:[#allocation2 + $0x10] sm:$0xff] }
 0x3c0   :  { %v2489_v22 = vpop.f32.mrf.mxu0  ;;  %v2495_v40 = vpop.f32.mrf.mxu1  ;;  %v1529_v41 = vsel %vm1137_vm6, %v3108_v63, -inf  ;;  %v1532_v43 = vsel %vm1137_vm6, %v3112_v39, -inf }
 0x3c1   :  { %1530 = vmax.xlane.f32.xlu0 %v1529_v41 }
 0x3c2   :  { %v1181_v32 = vpop.f32.mrf.mxu0  ;;  %v1227_v42 = vpop.f32.mrf.mxu1 }
 0x3c3   :  { %v3179_v32 = vld [vmem:[#allocation2 + $0x18] sm:$0xff] }
 0x3c4   :  { %v2490_v20 = vpop.f32.mrf.mxu0  ;;  %v2496_v27 = vpop.f32.mrf.mxu1 }
 0x3c5   :  { %1533 = vmax.xlane.f32.xlu0 %v1532_v43  ;;  %v3189_v27 = vld [vmem:[#allocation2 + $0x20] sm:$0xff] }
 0x3c6   :  { %v1270_v34 = vpop.f32.mrf.mxu0  ;;  %v1316_v44 = vpop.f32.mrf.mxu1 }
 0x3c7   :  { %v3120_v47 = vsel %vm3102_vm8, %v1270_v34, -1e+30  ;;  %v3124_v48 = vsel %vm3102_vm8, %v1316_v44, -1e+30  ;;  %v3191_v34 = vld [vmem:[#allocation2 + $0x28] sm:$0xff] }
 0x3c8   :  { %v2501_v31 = vpop.f32.mrf.mxu0  ;;  %v2507_v49 = vpop.f32.mrf.mxu1  ;;  %v1535_v50 = vsel %vm1137_vm6, %v3120_v47, -inf  ;;  %v1538_v52 = vsel %vm1137_vm6, %v3124_v48, -inf }
 0x3c9   :  { %1536 = vmax.xlane.f32.xlu1 %v1535_v50  ;;  %v1775_v31 = vsel %vm1773_vm10, %v2779_v10, 0 }
 0x3ca   :  { %v1273_v29 = vpop.f32.mrf.mxu0  ;;  %v1319_v51 = vpop.f32.mrf.mxu1  ;;  %2534 = vmatpush3.bf16.msra.mxu0 %v1775_v31 }
 0x3cb   :  { %2545 = vmatprep.subr.bf16.mxu0 %v2678_v23 }
 0x3cc   :  { %v2502_v37 = vpop.f32.mrf.mxu0  ;;  %v2508_v35 = vpop.f32.mrf.mxu1 }
 0x3cd   :  { %1539 = vmax.xlane.f32.xlu1 %v1538_v52  ;;  %v1821_v37 = vsel %vm1773_vm10, %v2781_v11, 0  ;;  %v3219_v35 = vld [vmem:[#allocation2 + $0x30] sm:$0xff] }
 0x3ce   :  { %v1362_v54 = vpop.f32.mrf.mxu0  ;;  %v1408_v55 = vpop.f32.mrf.mxu1  ;;  %2540 = vmatpush3.bf16.msra.mxu1 %v1821_v37 }
 0x3cf   :  { %v3132_v28 = vsel %vm3102_vm8, %v1362_v54, -1e+30  ;;  %v3136_v33 = vsel %vm3102_vm8, %v1408_v55, -1e+30  ;;  %2551 = vmatprep.subr.bf16.mxu1 %v2678_v23 }
 0x3d0   :  { %v2513_v36 = vpop.f32.mrf.mxu0  ;;  %v2519_v58 = vpop.f32.mrf.mxu1  ;;  %v1541_v59 = vsel %vm1137_vm6, %v3132_v28, -inf  ;;  %v1544_v45 = vsel %vm1137_vm6, %v3136_v33, -inf }
 0x3d1   :  { %1542 = vmax.xlane.f32.xlu0 %v1541_v59  ;;  %1545 = vmax.xlane.f32.xlu1 %v1544_v45 }
 0x3d2   :  { %v1365_v18 = vpop.f32.mrf.mxu0  ;;  %v1411_v61 = vpop.f32.mrf.mxu1 }
 0x3d4   :  { %v2514_v30 = vpop.f32.mrf.mxu0  ;;  %v2520_v62 = vpop.f32.mrf.mxu1 }
 0x3d6   :  { %v1454_v46 = vpop.f32.mrf.mxu0  ;;  %v1500_v2 = vpop.f32.mrf.mxu1 }
 0x3d7   :  { %v3144_v3 = vsel %vm3102_vm8, %v1454_v46, -1e+30  ;;  %v3148_v0 = vsel %vm3102_vm8, %v1500_v2, -1e+30 }
 0x3d8   :  { %v2525_v4 = vpop.f32.mrf.mxu0  ;;  %v2531_v5 = vpop.f32.mrf.mxu1  ;;  %v1547_v57 = vsel %vm1137_vm6, %v3144_v3, -inf  ;;  %v1550_v1 = vsel %vm1137_vm6, %v3148_v0, -inf }
 0x3d9   :  { %1548 = vmax.xlane.f32.xlu0 %v1547_v57  ;;  %1551 = vmax.xlane.f32.xlu1 %v1550_v1 }
 0x3da   :  { %v1457_v6 = vpop.f32.mrf.mxu0  ;;  %v1503_v7 = vpop.f32.mrf.mxu1 }
 0x3dc   :  { %v2526_v60 = vpop.f32.mrf.mxu0  ;;  %v2532_v21 = vpop.f32.mrf.mxu1 }
 0x44a   :  { %v1531_v24 = vpop.xlane.xlu0 %1530 }
 0x44b   :  { %v3157_v9 = vmax.f32 %v3154_v8, %v1531_v24 }
 0x44d   :  { %v1561_v56 = vsub.f32 %v3154_v8, %v3157_v9  ;;  %2155 = vst.msk [vmem:[#allocation2] sm:$0xff] %vm1697_vm9, %v3157_v9  ;;  %1587 = vperm.xlu0 %2623, %v3157_v9  }
 0x44e   :  { %v1534_v26 = vpop.xlane.xlu0 %1533 }
 0x44f   :  { %v3167_v38 = vmax.f32 %v3159_v25, %v1534_v26  ;;  %v1867_v26 = vsel %vm1773_vm10, %v2783_v12, 0 }
 0x451   :  { %v1562_v22 = vsub.f32 %v3159_v25, %v3167_v38  ;;  %2156 = vst.msk [vmem:[#allocation2 + $0x8] sm:$0xff] %vm1697_vm9, %v3167_v38  ;;  %1592 = vperm.xlu1 %2624, %v3167_v38  }
 0x452   :  { %v1537_v40 = vpop.xlane.xlu1 %1536 }
 0x453   :  { %v3177_v41 = vmax.f32 %v3169_v19, %v1537_v40 }
 0x455   :  { %v1563_v42 = vsub.f32 %v3169_v19, %v3177_v41  ;;  %2157 = vst.msk [vmem:[#allocation2 + $0x10] sm:$0xff] %vm1697_vm9, %v3177_v41  ;;  %1597 = vperm.xlu1 %2624, %v3177_v41  }
 0x456   :  { %v1540_v43 = vpop.xlane.xlu1 %1539 }
 0x457   :  { %v3187_v20 = vmax.f32 %v3179_v32, %v1540_v43 }
 0x459   :  { %v1564_v44 = vsub.f32 %v3179_v32, %v3187_v20  ;;  %2158 = vst.msk [vmem:[#allocation2 + $0x18] sm:$0xff] %vm1697_vm9, %v3187_v20  ;;  %1602 = vperm.xlu1 %2624, %v3187_v20  }
 0x45a   :  { %v1543_v49 = vpop.xlane.xlu0 %1542  ;;  %v1546_v50 = vpop.xlane.xlu1 %1545 }
 0x45b   :  { %v3201_v29 = vmax.f32 %v3189_v27, %v1543_v49  ;;  %v3204_v51 = vmax.f32 %v3191_v34, %v1546_v50  ;;  %v1913_v49 = vsel %vm1773_vm10, %v2785_v13, 0  ;;  %v1959_v13 = vsel %vm1773_vm10, %v2787_v14, 0 }
 0x45c   :  { %v2005_v14 = vsel %vm1773_vm10, %v2789_v15, 0  ;;  %v1575_v25 = vmul.f32 1.442695, %v1564_v44  ;;  %v1649_v44 = vld [vmem:[#allocation3] sm:$0xff] }
 0x45d   :  { %v1565_v52 = vsub.f32 %v3189_v27, %v3201_v29  ;;  %2159 = vst.msk [vmem:[#allocation2 + $0x20] sm:$0xff] %vm1697_vm9, %v3201_v29  ;;  %1607 = vperm.xlu1 %2624, %v3201_v29   ;;  %v1566_v10 = vsub.f32 %v3191_v34, %v3204_v51  ;;  %2160 = vst.msk [vmem:[#allocation2 + $0x28] sm:$0xff] %vm1697_vm9, %v3204_v51 }
 0x45f   :  { %v1577_v38 = vmul.f32 1.442695, %v1565_v52  ;;  %v1579_v8 = vmul.f32 1.442695, %v1566_v10  ;;  %v1650_v52 = vld [vmem:[#allocation3 + $0x8] sm:$0xff] }
 0x461   :  { %1612 = vperm.xlu1 %2624, %v3204_v51  }
 0x462   :  { %v1549_v54 = vpop.xlane.xlu0 %1548  ;;  %v1552_v55 = vpop.xlane.xlu1 %1551 }
 0x463   :  { %v3225_v36 = vmax.f32 %v3219_v35, %v1549_v54  ;;  %v3228_v58 = vmax.f32 %v3221_v53, %v1552_v55 }
 0x465   :  { %v1567_v11 = vsub.f32 %v3219_v35, %v3225_v36  ;;  %2161 = vst.msk [vmem:[#allocation2 + $0x30] sm:$0xff] %vm1697_vm9, %v3225_v36  ;;  %1617 = vperm.xlu1 %2624, %v3225_v36   ;;  %v1568_v59 = vsub.f32 %v3221_v53, %v3228_v58  ;;  %2162 = vst.msk [vmem:[#allocation2 + $0x38] sm:$0xff] %vm1697_vm9, %v3228_v58  ;;  %v1651_v36 = vld [vmem:[#allocation3 + $0x10] sm:$0xff] }
 0x467   :  { %v1581_v9 = vmul.f32 1.442695, %v1567_v11 }
 0x469   :  { %1622 = vperm.xlu1 %2624, %v3228_v58  }
 0x4c8   :  { %v1588_v45 = vpop.permute.xlu0 %1587 }
 0x4c9   :  { %v1625_v18 = vsub.f32 %v3108_v63, %v1588_v45 }
 0x4cb   :  { %v1633_v61 = vmul.f32 1.442695, %v1625_v18 }
 0x4cc   :  { %v1593_v30 = vpop.permute.xlu1 %1592 }
 0x4cd   :  { %2625 = vpow2.f32 %v1633_v61  ;;  %v1626_v62 = vsub.f32 %v3112_v39, %v1593_v30 }
 0x4cf   :  { %v1635_v46 = vmul.f32 1.442695, %v1626_v62 }
 0x4d0   :  { %v1598_v2 = vpop.permute.xlu1 %1597 }
 0x4d1   :  { %2627 = vpow2.f32 %v1635_v46  ;;  %v1627_v4 = vsub.f32 %v3120_v47, %v1598_v2 }
 0x4d3   :  { %v1637_v5 = vmul.f32 1.442695, %v1627_v4  ;;  %v2051_v4 = vsel %vm1773_vm10, %v2791_v16, 0 }
 0x4d4   :  { %v1603_v57 = vpop.permute.xlu1 %1602 }
 0x4d5   :  { %2629 = vpow2.f32 %v1637_v5  ;;  %v1628_v1 = vsub.f32 %v3124_v48, %v1603_v57 }
 0x4d7   :  { %v1639_v6 = vmul.f32 1.442695, %v1628_v1  ;;  %v2097_v1 = vsel %vm1773_vm10, %v2793_v17, 0 }
 0x4d8   :  { %v1608_v7 = vpop.permute.xlu1 %1607 }
 0x4d9   :  { %2631 = vpow2.f32 %v1639_v6  ;;  %v1629_v63 = vsub.f32 %v3132_v28, %v1608_v7 }
 0x4da   :  { %v2626_v60 = vpop.eup %2625 }
 0x4db   :  { %v1641_v21 = vmul.f32 1.442695, %v1629_v63  ;;  %v1665_v24 = vsel %vm1137_vm6, %v2626_v60, 0.0  ;;  %v1762_v39 = vpack.c.bf16 %v2626_v60, %v2626_v60  ;;  %v1571_v60 = vmul.f32 1.442695, %v1562_v22 }
 0x4dc   :  { %v1613_v40 = vpop.permute.xlu1 %1612  ;;  %1666 = vadd.xlane.f32.xlu1 %v1665_v24  ;;  %v1569_v24 = vmul.f32 1.442695, %v1561_v56  ;;  %v1583_v56 = vmul.f32 1.442695, %v1568_v59 }
 0x4dd   :  { %2633 = vpow2.f32 %v1641_v21  ;;  %v1630_v47 = vsub.f32 %v3136_v33, %v1613_v40  ;;  %2536 = vmatmul.mubr.msk.bf16.vlgmr.msra.gmra.mxu0 %vm1137_vm6, %v1762_v39  ;;  %v1652_v39 = vld [vmem:[#allocation3 + $0x18] sm:$0xff] }
 0x4de   :  { %v2628_v48 = vpop.eup %2627  ;;  %2546 = vmatpush3.bf16.msra.mxu0 %v1867_v26  ;;  %2547 = vmatprep.mubr.msk.bf16.mxu0 %vm2679_vm7, %v2678_v23 }
 0x4df   :  { %v1643_v28 = vmul.f32 1.442695, %v1630_v47  ;;  %v1668_v43 = vsel %vm1137_vm6, %v2628_v48, 0.0  ;;  %v1763_v31 = vpack.c.bf16 %v2628_v48, %v2628_v48  ;;  %2557 = vmatprep.subr.bf16.mxu0 %v2678_v23 }
 0x4e0   :  { %1669 = vadd.xlane.f32.xlu0 %v1668_v43  ;;  %v1618_v12 = vpop.permute.xlu1 %1617 }
 0x4e1   :  { %2635 = vpow2.f32 %v1643_v28  ;;  %v1631_v33 = vsub.f32 %v3144_v3, %v1618_v12  ;;  %2542 = vmatmul.mubr.msk.bf16.vlgmr.msra.gmra.mxu1 %vm1137_vm6, %v1763_v31  ;;  %v1653_v28 = vld [vmem:[#allocation3 + $0x20] sm:$0xff] }
 0x4e2   :  { %v2630_v50 = vpop.eup %2629  ;;  %2552 = vmatpush3.bf16.msra.mxu1 %v1913_v49  ;;  %2553 = vmatprep.mubr.msk.bf16.mxu1 %vm2679_vm7, %v2678_v23 }
 0x4e3   :  { %v1645_v37 = vmul.f32 1.442695, %v1631_v33  ;;  %v1671_v54 = vsel %vm1137_vm6, %v2630_v50, 0.0  ;;  %v1764_v55 = vpack.c.bf16 %v2630_v50, %v2630_v50  ;;  %2563 = vmatprep.subr.bf16.mxu1 %v2678_v23  ;;  %v1654_v33 = vld [vmem:[#allocation3 + $0x28] sm:$0xff] }
 0x4e4   :  { %1672 = vadd.xlane.f32.xlu0 %v1671_v54  ;;  %v1623_v45 = vpop.permute.xlu1 %1622 }
 0x4e5   :  { %2637 = vpow2.f32 %v1645_v37  ;;  %v1632_v3 = vsub.f32 %v3148_v0, %v1623_v45  ;;  %2548 = vmatmul.mubr.msk.bf16.vlgmr.msra.gmra.mxu0 %vm1137_vm6, %v1764_v55 }
 0x4e6   :  { %v2632_v18 = vpop.eup %2631  ;;  %2558 = vmatpush3.bf16.msra.mxu0 %v1959_v13  ;;  %2559 = vmatprep.mubr.msk.bf16.mxu0 %vm2679_vm7, %v2678_v23  ;;  %v1655_v13 = vld [vmem:[#allocation3 + $0x30] sm:$0xff] }
 0x4e7   :  { %v1647_v61 = vmul.f32 1.442695, %v1632_v3  ;;  %v1674_v30 = vsel %vm1137_vm6, %v2632_v18, 0.0  ;;  %v1765_v62 = vpack.c.bf16 %v2632_v18, %v2632_v18  ;;  %2569 = vmatprep.subr.bf16.mxu0 %v2678_v23 }
 0x4e8   :  { %1675 = vadd.xlane.f32.xlu1 %v1674_v30 }
 0x4e9   :  { %2639 = vpow2.f32 %v1647_v61  ;;  %2554 = vmatmul.mubr.msk.bf16.vlgmr.msra.gmra.mxu1 %vm1137_vm6, %v1765_v62  ;;  %v1656_v62 = vld [vmem:[#allocation3 + $0x38] sm:$0xff] }
 0x4ea   :  { %v2634_v0 = vpop.eup %2633  ;;  %2564 = vmatpush3.bf16.msra.mxu1 %v2005_v14  ;;  %2565 = vmatprep.mubr.msk.bf16.mxu1 %vm2679_vm7, %v2678_v23  ;;  %2641 = vpow2.f32 %v1571_v60 }
 0x4eb   :  { %v1677_v46 = vsel %vm1137_vm6, %v2634_v0, 0.0  ;;  %v1766_v2 = vpack.c.bf16 %v2634_v0, %v2634_v0  ;;  %2575 = vmatprep.subr.bf16.mxu1 %v2678_v23  ;;  %2643 = vpow2.f32 %v1569_v24 }
 0x4ec   :  { %1678 = vadd.xlane.f32.xlu0 %v1677_v46 }
 0x4ed   :  { %2560 = vmatmul.mubr.msk.bf16.vlgmr.msra.gmra.mxu0 %vm1137_vm6, %v1766_v2 }
 0x4ee   :  { %v2636_v15 = vpop.eup %2635  ;;  %2570 = vmatpush3.bf16.msra.mxu0 %v2051_v4  ;;  %2571 = vmatprep.mubr.msk.bf16.mxu0 %vm2679_vm7, %v2678_v23 }
 0x4ef   :  { %v1680_v5 = vsel %vm1137_vm6, %v2636_v15, 0.0  ;;  %v1767_v57 = vpack.c.bf16 %v2636_v15, %v2636_v15 }
 0x4f0   :  { %1681 = vadd.xlane.f32.xlu1 %v1680_v5 }
 0x4f1   :  { %2566 = vmatmul.mubr.msk.bf16.vlgmr.msra.gmra.mxu1 %vm1137_vm6, %v1767_v57 }
 0x4f2   :  { %v2638_v16 = vpop.eup %2637  ;;  %2576 = vmatpush3.bf16.msra.mxu1 %v2097_v1  ;;  %2577 = vmatprep.mubr.msk.bf16.mxu1 %vm2679_vm7, %v2678_v23  ;;  %v1573_v23 = vmul.f32 1.442695, %v1563_v42 }
 0x4f3   :  { %v1683_v6 = vsel %vm1137_vm6, %v2638_v16, 0.0  ;;  %v1768_v7 = vpack.c.bf16 %v2638_v16, %v2638_v16 }
 0x4f4   :  { %1684 = vadd.xlane.f32.xlu0 %v1683_v6  ;;  %2645 = vpow2.f32 %v1573_v23 }
 0x4f5   :  { %2572 = vmatmul.mubr.msk.bf16.vlgmr.msra.gmra.mxu0 %vm1137_vm6, %v1768_v7  ;;  %2647 = vpow2.f32 %v1575_v25 }
 0x4f6   :  { %v2640_v63 = vpop.eup %2639  ;;  %2649 = vpow2.f32 %v1577_v38  ;;  %v1707_v38 = vld [vmem:[#allocation4 + $0x8] sm:$0xff] }
 0x4f7   :  { %v1686_v17 = vsel %vm1137_vm6, %v2640_v63, 0.0  ;;  %v1769_v21 = vpack.c.bf16 %v2640_v63, %v2640_v63  ;;  %2651 = vpow2.f32 %v1579_v8  ;;  %v2642_v19 = vpop.eup %2641 }
 0x4f8   :  { %1687 = vadd.xlane.f32.xlu1 %v1686_v17  ;;  %2653 = vpow2.f32 %v1581_v9  ;;  %v2644_v22 = vpop.eup %2643  ;;  %v1658_v35 = vmul.f32 %v2642_v19, %v1650_v52 }
 0x4f9   :  { %2578 = vmatmul.mubr.msk.bf16.vlgmr.msra.gmra.mxu1 %vm1137_vm6, %v1769_v21  ;;  %2655 = vpow2.f32 %v1583_v56  ;;  %v1657_v29 = vmul.f32 %v2644_v22, %v1649_v44  ;;  %v1706_v21 = vld [vmem:[#allocation4] sm:$0xff] }
 0x501   :  { %v2646_v41 = vpop.eup %2645 }
 0x502   :  { %v2648_v32 = vpop.eup %2647  ;;  %v1659_v11 = vmul.f32 %v2646_v41, %v1651_v36 }
 0x503   :  { %v2650_v42 = vpop.eup %2649  ;;  %v1660_v47 = vmul.f32 %v2648_v32, %v1652_v39 }
 0x504   :  { %v2652_v20 = vpop.eup %2651  ;;  %v1661_v49 = vmul.f32 %v2650_v42, %v1653_v28 }
 0x505   :  { %v2654_v27 = vpop.eup %2653  ;;  %v1662_v54 = vmul.f32 %v2652_v20, %v1654_v33 }
 0x506   :  { %v2656_v34 = vpop.eup %2655  ;;  %v1663_v18 = vmul.f32 %v2654_v27, %v1655_v13  ;;  %v1712_v13 = vld [vmem:[#allocation4 + $0x30] sm:$0xff] }
 0x507   :  { %v1664_v46 = vmul.f32 %v2656_v34, %v1656_v62 }
 0x509   :  { %1721 = vperm.xlu1 %2624, %v2642_v19  }
 0x50a   :  { %1716 = vperm.xlu0 %2623, %v2644_v22  }
 0x50d   :  { %1726 = vperm.xlu1 %2624, %v2646_v41   ;;  %v1708_v41 = vld [vmem:[#allocation4 + $0x10] sm:$0xff] }
 0x50e   :  { %1731 = vperm.xlu0 %2623, %v2648_v32  }
 0x511   :  { %1736 = vperm.xlu1 %2624, %v2650_v42  }
 0x512   :  { %1741 = vperm.xlu0 %2623, %v2652_v20  }
 0x515   :  { %1746 = vperm.xlu1 %2624, %v2654_v27  }
 0x516   :  { %1751 = vperm.xlu0 %2623, %v2656_v34  }
 0x565   :  { %v1667_v51 = vpop.xlane.xlu1 %1666 }
 0x566   :  { %v1689_v10 = vadd.f32 %v1667_v51, %v1657_v29  ;;  %v1709_v51 = vld [vmem:[#allocation4 + $0x18] sm:$0xff] }
 0x568   :  { %1698 = vst.msk [vmem:[#allocation3] sm:$0xff] %vm1697_vm9, %v1689_v10 }
 0x569   :  { %v1670_v53 = vpop.xlane.xlu0 %1669 }
 0x56a   :  { %v1690_v58 = vadd.f32 %v1670_v53, %v1658_v35 }
 0x56c   :  { %1699 = vst.msk [vmem:[#allocation3 + $0x8] sm:$0xff] %vm1697_vm9, %v1690_v58 }
 0x56d   :  { %v1673_v59 = vpop.xlane.xlu0 %1672 }
 0x56e   :  { %v1691_v26 = vadd.f32 %v1673_v59, %v1659_v11  ;;  %v1710_v59 = vld [vmem:[#allocation4 + $0x20] sm:$0xff] }
 0x56f   :  { %v2163_v40 = vld [vmem:[#allocation3] sm:$0xff] }
 0x570   :  { %1700 = vst.msk [vmem:[#allocation3 + $0x10] sm:$0xff] %vm1697_vm9, %v1691_v26  ;;  %2657 = vrcp.f32 %v2163_v40 }
 0x571   :  { %v1676_v48 = vpop.xlane.xlu1 %1675 }
 0x572   :  { %v1692_v43 = vadd.f32 %v1676_v48, %v1660_v47 }
 0x573   :  { %v2164_v31 = vld [vmem:[#allocation3 + $0x8] sm:$0xff] }
 0x574   :  { %1701 = vst.msk [vmem:[#allocation3 + $0x18] sm:$0xff] %vm1697_vm9, %v1692_v43  ;;  %2659 = vrcp.f32 %v2164_v31  ;;  %v1711_v31 = vld [vmem:[#allocation4 + $0x28] sm:$0xff] }
 0x575   :  { %v1679_v12 = vpop.xlane.xlu0 %1678 }
 0x576   :  { %v1693_v50 = vadd.f32 %v1679_v12, %v1661_v49 }
 0x577   :  { %v2165_v37 = vld [vmem:[#allocation3 + $0x10] sm:$0xff] }
 0x578   :  { %1702 = vst.msk [vmem:[#allocation3 + $0x20] sm:$0xff] %vm1697_vm9, %v1693_v50  ;;  %2661 = vrcp.f32 %v2165_v37 }
 0x579   :  { %v1682_v55 = vpop.xlane.xlu1 %1681 }
 0x57a   :  { %v1694_v45 = vadd.f32 %v1682_v55, %v1662_v54 }
 0x57b   :  { %v2166_v3 = vld [vmem:[#allocation3 + $0x18] sm:$0xff] }
 0x57c   :  { %1703 = vst.msk [vmem:[#allocation3 + $0x28] sm:$0xff] %vm1697_vm9, %v1694_v45  ;;  %2663 = vrcp.f32 %v2166_v3 }
 0x57d   :  { %v2658_v61 = vpop.eup %2657  ;;  %v1685_v30 = vpop.xlane.xlu0 %1684 }
 0x57e   :  { %v1695_v14 = vadd.f32 %v1685_v30, %v1663_v18  ;;  %2189 = vperm.xlu1 %2624, %v2658_v61  }
 0x57f   :  { %v2167_v0 = vld [vmem:[#allocation3 + $0x20] sm:$0xff] }
 0x580   :  { %1704 = vst.msk [vmem:[#allocation3 + $0x30] sm:$0xff] %vm1697_vm9, %v1695_v14  ;;  %2665 = vrcp.f32 %v2167_v0  ;;  %v1713_v0 = vld [vmem:[#allocation4 + $0x38] sm:$0xff] }
 0x581   :  { %v2660_v2 = vpop.eup %2659  ;;  %v1688_v4 = vpop.xlane.xlu1 %1687 }
 0x582   :  { %v1696_v15 = vadd.f32 %v1688_v4, %v1664_v46  ;;  %2194 = vperm.xlu0 %2623, %v2660_v2  }
 0x583   :  { %v2168_v5 = vld [vmem:[#allocation3 + $0x28] sm:$0xff] }
 0x584   :  { %1705 = vst.msk [vmem:[#allocation3 + $0x38] sm:$0xff] %vm1697_vm9, %v1696_v15  ;;  %2667 = vrcp.f32 %v2168_v5 }
 0x585   :  { %v2662_v57 = vpop.eup %2661  ;;  %v1717_v24 = vpop.permute.xlu0 %1716 }
 0x586   :  { %2199 = vperm.xlu1 %2624, %v2662_v57   ;;  %v1722_v23 = vpop.permute.xlu1 %1721  ;;  %v1754_v25 = vmul.f32 %v1717_v24, %v1706_v21 }
 0x587   :  { %v2169_v1 = vld [vmem:[#allocation3 + $0x30] sm:$0xff]  ;;  %v1755_v19 = vmul.f32 %v1722_v23, %v1707_v38 }
 0x588   :  { %2669 = vrcp.f32 %v2169_v1 }
 0x589   :  { %v2664_v16 = vpop.eup %2663  ;;  %v1732_v29 = vpop.permute.xlu0 %1731 }
 0x58a   :  { %2204 = vperm.xlu0 %2623, %v2664_v16   ;;  %v1727_v22 = vpop.permute.xlu1 %1726  ;;  %v1757_v58 = vmul.f32 %v1732_v29, %v1709_v51 }
 0x58b   :  { %v2170_v6 = vld [vmem:[#allocation3 + $0x38] sm:$0xff]  ;;  %v1756_v44 = vmul.f32 %v1727_v22, %v1708_v41 }
 0x58c   :  { %2671 = vrcp.f32 %v2170_v6 }
 0x58d   :  { %v2666_v7 = vpop.eup %2665  ;;  %v1742_v43 = vpop.permute.xlu0 %1741 }
 0x58e   :  { %2209 = vperm.xlu1 %2624, %v2666_v7   ;;  %v1737_v11 = vpop.permute.xlu1 %1736  ;;  %v1759_v54 = vmul.f32 %v1742_v43, %v1711_v31 }
 0x58f   :  { %v1758_v28 = vmul.f32 %v1737_v11, %v1710_v59 }
 0x591   :  { %v2668_v63 = vpop.eup %2667  ;;  %v1752_v14 = vpop.permute.xlu0 %1751 }
 0x592   :  { %2214 = vperm.xlu0 %2623, %v2668_v63   ;;  %v1747_v55 = vpop.permute.xlu1 %1746  ;;  %v1761_v57 = vmul.f32 %v1752_v14, %v1713_v0 }
 0x593   :  { %v1760_v62 = vmul.f32 %v1747_v55, %v1712_v13 }
 0x595   :  { %v2670_v60 = vpop.eup %2669 }
 0x596   :  { %2219 = vperm.xlu1 %2624, %v2670_v60  }
 0x599   :  { %v2672_v17 = vpop.eup %2671 }
 0x59a   :  { %2224 = vperm.xlu0 %2623, %v2672_v17  }
 0x59d   :  { %v1811_v8 = vpop.f32.mrf.mxu0 }
 0x59e   :  { %v2139_v9 = vadd.f32 %v1811_v8, %v1754_v25 }
 0x59f   :  { %v2537_v56 = vpop.f32.mrf.mxu0 }
 0x5a0   :  { %2147 = vst.msk [vmem:[#allocation4] sm:$0xff] %vm1137_vm6, %v2139_v9 }
 0x5a1   :  { %v1814_v32 = vpop.f32.mrf.mxu0  ;;  %v1857_v42 = vpop.f32.mrf.mxu1 }
 0x5a2   :  { %v2140_v20 = vadd.f32 %v1857_v42, %v1755_v19 }
 0x5a3   :  { %v2538_v27 = vpop.f32.mrf.mxu0  ;;  %v2543_v34 = vpop.f32.mrf.mxu1 }
 0x5a4   :  { %2148 = vst.msk [vmem:[#allocation4 + $0x8] sm:$0xff] %vm1137_vm6, %v2140_v20 }
 0x5a5   :  { %v1860_v52 = vpop.f32.mrf.mxu1  ;;  %v1903_v10 = vpop.f32.mrf.mxu0 }
 0x5a6   :  { %v2141_v35 = vadd.f32 %v1903_v10, %v1756_v44 }
 0x5a7   :  { %v2544_v53 = vpop.f32.mrf.mxu1  ;;  %v2549_v36 = vpop.f32.mrf.mxu0  ;;  %v2179_v24 = vld [vmem:[#allocation4] sm:$0xff] }
 0x5a8   :  { %2149 = vst.msk [vmem:[#allocation4 + $0x10] sm:$0xff] %vm1137_vm6, %v2141_v35 }
 0x5a9   :  { %v1906_v39 = vpop.f32.mrf.mxu0  ;;  %v1949_v26 = vpop.f32.mrf.mxu1 }
 0x5aa   :  { %v2142_v40 = vadd.f32 %v1949_v26, %v1757_v58 }
 0x5ab   :  { %v2550_v47 = vpop.f32.mrf.mxu0  ;;  %v2555_v48 = vpop.f32.mrf.mxu1  ;;  %v2180_v38 = vld [vmem:[#allocation4 + $0x8] sm:$0xff] }
 0x5ac   :  { %2150 = vst.msk [vmem:[#allocation4 + $0x18] sm:$0xff] %vm1137_vm6, %v2142_v40 }
 0x5ad   :  { %v1952_v49 = vpop.f32.mrf.mxu1  ;;  %v1995_v12 = vpop.f32.mrf.mxu0 }
 0x5ae   :  { %v2143_v33 = vadd.f32 %v1995_v12, %v1758_v28 }
 0x5af   :  { %v2556_v50 = vpop.f32.mrf.mxu1  ;;  %v2561_v37 = vpop.f32.mrf.mxu0  ;;  %v2181_v22 = vld [vmem:[#allocation4 + $0x10] sm:$0xff] }
 0x5b0   :  { %2151 = vst.msk [vmem:[#allocation4 + $0x20] sm:$0xff] %vm1137_vm6, %v2143_v33 }
 0x5b1   :  { %v1998_v45 = vpop.f32.mrf.mxu0  ;;  %v2041_v3 = vpop.f32.mrf.mxu1 }
 0x5b2   :  { %v2144_v18 = vadd.f32 %v2041_v3, %v1759_v54 }
 0x5b3   :  { %v2562_v61 = vpop.f32.mrf.mxu0  ;;  %v2567_v30 = vpop.f32.mrf.mxu1  ;;  %v2182_v42 = vld [vmem:[#allocation4 + $0x18] sm:$0xff] }
 0x5b4   :  { %2152 = vst.msk [vmem:[#allocation4 + $0x28] sm:$0xff] %vm1137_vm6, %v2144_v18 }
 0x5b5   :  { %v2044_v46 = vpop.f32.mrf.mxu1  ;;  %v2087_v2 = vpop.f32.mrf.mxu0 }
 0x5b6   :  { %v2145_v4 = vadd.f32 %v2087_v2, %v1760_v62 }
 0x5b7   :  { %v2568_v15 = vpop.f32.mrf.mxu1  ;;  %v2573_v5 = vpop.f32.mrf.mxu0  ;;  %v2183_v29 = vld [vmem:[#allocation4 + $0x20] sm:$0xff] }
 0x5b8   :  { %2153 = vst.msk [vmem:[#allocation4 + $0x30] sm:$0xff] %vm1137_vm6, %v2145_v4 }
 0x5b9   :  { %v2090_v1 = vpop.f32.mrf.mxu0  ;;  %v2133_v16 = vpop.f32.mrf.mxu1 }
 0x5ba   :  { %v2146_v6 = vadd.f32 %v2133_v16, %v1761_v57 }
 0x5bb   :  { %v2574_v7 = vpop.f32.mrf.mxu0  ;;  %v2579_v63 = vpop.f32.mrf.mxu1  ;;  %v2184_v10 = vld [vmem:[#allocation4 + $0x28] sm:$0xff] }
 0x5bc   :  { %2154 = vst.msk [vmem:[#allocation4 + $0x38] sm:$0xff] %vm1137_vm6, %v2146_v6 }
 0x5bd   :  { %v2136_v60 = vpop.f32.mrf.mxu1 }
 0x5bf   :  { %v2580_v17 = vpop.f32.mrf.mxu1  ;;  %v2185_v11 = vld [vmem:[#allocation4 + $0x30] sm:$0xff] }
 0x5c3   :  { %v2186_v26 = vld [vmem:[#allocation4 + $0x38] sm:$0xff] }
 0x5f9   :  { %v2190_v21 = vpop.permute.xlu1 %2189 }
 0x5fa   :  { %v2227_v23 = vmul.f32 %v2190_v21, %v2179_v24 }
 0x5fc   :  { %v2235_v25 = vpack.c.bf16 %v2227_v23, %v2227_v23 }
 0x5fd   :  { %v2195_v8 = vpop.permute.xlu0 %2194 }
 0x5fe   :  { %2244 = vst.msk [vmem:[%s2725_s29] sm:$0xf] %vm2243_vm11, %v2235_v25  ;;  %v2228_v9 = vmul.f32 %v2195_v8, %v2180_v38 }
 0x600   :  { %v2236_v56 = vpack.c.bf16 %v2228_v9, %v2228_v9 }
 0x601   :  { %v2200_v19 = vpop.permute.xlu1 %2199 }
 0x602   :  { %2245 = vst.msk [vmem:[%s2725_s29 + $0x4] sm:$0xf] %vm2243_vm11, %v2236_v56  ;;  %v2229_v41 = vmul.f32 %v2200_v19, %v2181_v22 }
 0x604   :  { %v2237_v32 = vpack.c.bf16 %v2229_v41, %v2229_v41 }
 0x605   :  { %v2205_v20 = vpop.permute.xlu0 %2204 }
 0x606   :  { %2246 = vst.msk [vmem:[%s2725_s29 + $0x8] sm:$0xf] %vm2243_vm11, %v2237_v32  ;;  %v2230_v27 = vmul.f32 %v2205_v20, %v2182_v42 }
 0x608   :  { %v2238_v34 = vpack.c.bf16 %v2230_v27, %v2230_v27 }
 0x609   :  { %v2210_v44 = vpop.permute.xlu1 %2209 }
 0x60a   :  { %2247 = vst.msk [vmem:[%s2725_s29 + $0xc] sm:$0xf] %vm2243_vm11, %v2238_v34  ;;  %v2231_v51 = vmul.f32 %v2210_v44, %v2183_v29 }
 0x60c   :  { %v2239_v52 = vpack.c.bf16 %v2231_v51, %v2231_v51 }
 0x60d   :  { %v2215_v35 = vpop.permute.xlu0 %2214 }
 0x60e   :  { %2248 = vst.msk [vmem:[%s2725_s29 + $0x10] sm:$0xf] %vm2243_vm11, %v2239_v52  ;;  %v2232_v53 = vmul.f32 %v2215_v35, %v2184_v10 }
 0x610   :  { %v2240_v36 = vpack.c.bf16 %v2232_v53, %v2232_v53 }
 0x611   :  { %v2220_v58 = vpop.permute.xlu1 %2219 }
 0x612   :  { %2249 = vst.msk [vmem:[%s2725_s29 + $0x14] sm:$0xf] %vm2243_vm11, %v2240_v36  ;;  %v2233_v59 = vmul.f32 %v2220_v58, %v2185_v11 }
 0x614   :  { %v2241_v39 = vpack.c.bf16 %v2233_v59, %v2233_v59 }
 0x615   :  { %v2225_v40 = vpop.permute.xlu0 %2224 }
 0x616   :  { %2250 = vst.msk [vmem:[%s2725_s29 + $0x18] sm:$0xf] %vm2243_vm11, %v2241_v39  ;;  %v2234_v47 = vmul.f32 %v2225_v40, %v2186_v26 }
 0x618   :  { %v2242_v48 = vpack.c.bf16 %v2234_v47, %v2234_v47 }
 0x61a   :  { %2251 = vst.msk [vmem:[%s2725_s29 + $0x1c] sm:$0xf] %vm2243_vm11, %v2242_v48 }
 0x61b PF:  {}

</bundles_post_ra>
